<compile_context>
chip_gen: v7x
topology: tpu7x:2x2x1
jax: 0.10.0
libtpu: 0.0.40
codegen_flags: <defaults>
</compile_context>

<pallas_src>
import math
from functools import partial

import jax
import jax.numpy as jnp
from jax.experimental import pallas as pl
from jax.experimental.pallas import tpu as pltpu


# ---------------------------------------------------------------------------
# Fused encoder stack: grid = (row_blocks, num_layers)
#   - activations resident in VMEM scratch across the layer axis
#   - heads handled as a leading batch axis (no lane slicing / masked stores)
# ---------------------------------------------------------------------------
def stack_kernel(x_hbm, mask_ref, wqkv_ref, bqkv_ref, wo_ref, bo_ref,
                 ln1g_ref, ln1b_ref, w1_ref, b1_ref, w2_ref, b2_ref,
                 ln2g_ref, ln2b_ref, h_out_ref, h_ref, copy_sem,
                 *, num_heads, head_dim, rows_per_block):
    b = pl.program_id(0)
    l = pl.program_id(1)
    n_layers = pl.num_programs(1)
    H, dh, Mb = num_heads, head_dim, rows_per_block
    scale = 1.0 / math.sqrt(dh)
    eps = 1e-5

    # Layer 0: pull this row-block of the embedded inputs HBM -> resident VMEM
    # scratch (the input is NOT kept resident for the remaining layers).
    @pl.when(l == 0)
    def _():
        row0 = pl.multiple_of(b * Mb, Mb)
        cp = pltpu.make_async_copy(x_hbm.at[pl.ds(row0, Mb), :], h_ref, copy_sem)
        cp.start()
        cp.wait()

    x = h_ref[...]                                      # (Mb, D) f32
    D = x.shape[-1]

    # --- self-attention, heads batched on a leading axis ---------------------
    # wqkv_ref[0]: (3H, D, dh) -- q/k/v x head stacked on the leading axis.
    xh = jnp.broadcast_to(x, (3 * H, Mb, D))
    qkv = jax.lax.dot_general(
        xh, wqkv_ref[0], (((2,), (1,)), ((0,), (0,))),
        preferred_element_type=jnp.float32) + bqkv_ref[0]          # (3H, Mb, dh)
    q = qkv[0:H]                                                    # (H, Mb, dh)
    k = qkv[H:2 * H]
    v = qkv[2 * H:3 * H]

    # scores: batched q @ k^T over heads (no per-head loop, no .T materialized)
    s = jax.lax.dot_general(
        q, k, (((2,), (2,)), ((0,), (0,))),
        preferred_element_type=jnp.float32) * scale                 # (H, Mb, Mb)
    s = s + mask_ref[...]            # hoisted block-diagonal batch mask
    s = s - jnp.max(s, axis=-1, keepdims=True)
    p = jnp.exp(s)
    p = p / jnp.sum(p, axis=-1, keepdims=True)

    o_heads = jax.lax.dot_general(
        p, v, (((2,), (1,)), ((0,), (0,))),
        preferred_element_type=jnp.float32)                         # (H, Mb, dh)

    # Fold heads with the output projection: batched matmul + head reduction
    # (replaces concat + masked per-head stores).  wo_ref[0]: (H, dh, D).
    attn = jax.lax.dot_general(
        o_heads, wo_ref[0], (((2,), (1,)), ((0,), (0,))),
        preferred_element_type=jnp.float32)                         # (H, Mb, D)
    attn = jnp.sum(attn, axis=0) + bo_ref[0]                        # (Mb, D)

    def _ln(z, g, beta):
        mu = jnp.mean(z, axis=-1, keepdims=True)
        var = jnp.mean((z - mu) ** 2, axis=-1, keepdims=True)
        return (z - mu) * jax.lax.rsqrt(var + eps) * g + beta

    # residual + post-LayerNorm 1
    x1 = _ln(x + attn, ln1g_ref[0], ln1b_ref[0])

    # --- feed-forward: Linear -> ReLU -> Linear ------------------------------
    hid = jnp.maximum(
        jnp.dot(x1, w1_ref[0], preferred_element_type=jnp.float32) + b1_ref[0],
        0.0)
    ff = jnp.dot(hid, w2_ref[0], preferred_element_type=jnp.float32) + b2_ref[0]

    # residual + post-LayerNorm 2
    out = _ln(x1 + ff, ln2g_ref[0], ln2b_ref[0])
    h_ref[...] = out

    @pl.when(l == n_layers - 1)
    def _():
        h_out_ref[...] = out.astype(h_out_ref.dtype)


# ---------------------------------------------------------------------------
# Final vocab projection: separate call, tiled over the padded vocab axis
# ---------------------------------------------------------------------------
def proj_kernel(h_ref, w_ref, b_ref, o_ref):
    o_ref[...] = (jnp.dot(h_ref[...], w_ref[...],
                          preferred_element_type=jnp.float32)
                  + b_ref[...]).astype(o_ref.dtype)


# ---------------------------------------------------------------------------
# Wrapper
# ---------------------------------------------------------------------------
def fused_transformer(x2d, params, num_heads, seq):
    M, D = x2d.shape
    L = params["wqkv"].shape[0]
    F = params["w1"].shape[-1]
    V = params["out_w"].shape[1]
    H = num_heads
    dh = D // H
    B = M // seq

    # Row-block split along batch boundaries (megacore-friendly; attention is
    # block-diagonal per batch so this is always legal).
    nb = 2 if (B >= 2 and B % 2 == 0 and (M // 2) % 8 == 0) else 1
    Mb = M // nb

    # Hoisted additive block-diagonal mask (same structure for every block).
    rows = jnp.arange(Mb) // seq
    neg_mask = jnp.where(rows[:, None] == rows[None, :], 0.0, -1e30
                         ).astype(jnp.float32)

    # Host-side per-head weight layouts: head on a leading axis, never a lane
    # slice in-kernel.
    wqkvh = params["wqkv"].reshape(L, D, 3 * H, dh).transpose(0, 2, 1, 3)  # (L,3H,D,dh)
    bqkvh = params["bqkv"].reshape(L, 3 * H, 1, dh)                        # (L,3H,1,dh)
    wo_h = params["wo"].reshape(L, H, dh, D)                               # (L,H,dh,D)

    def wspec(shape):   # per-layer stacked weight, blocked at 1 on the L axis
        nz = (0,) * len(shape)
        return pl.BlockSpec((1,) + shape, lambda b, l, _nz=nz: (l,) + _nz)

    hidden = pl.pallas_call(
        partial(stack_kernel, num_heads=H, head_dim=dh, rows_per_block=Mb),
        out_shape=jax.ShapeDtypeStruct((M, D), jnp.float32),
        grid=(nb, L),
        in_specs=[
            pl.BlockSpec(memory_space=pl.ANY),                 # embedded inputs (HBM)
            pl.BlockSpec((Mb, Mb), lambda b, l: (0, 0)),       # hoisted mask
            wspec((3 * H, D, dh)), wspec((3 * H, 1, dh)),      # qkv proj (per head)
            wspec((H, dh, D)), wspec((1, D)),                  # attn out proj
            wspec((1, D)), wspec((1, D)),                      # ln1
            wspec((D, F)), wspec((1, F)),                      # ffn linear1
            wspec((F, D)), wspec((1, D)),                      # ffn linear2
            wspec((1, D)), wspec((1, D)),                      # ln2
        ],
        out_specs=pl.BlockSpec((Mb, D), lambda b, l: (b, 0)),
        scratch_shapes=[
            pltpu.VMEM((Mb, D), jnp.float32),                  # resident activations
            pltpu.SemaphoreType.DMA,                           # input-load DMA sem
        ],
        compiler_params=pltpu.CompilerParams(
            dimension_semantics=("parallel", "arbitrary"),
            vmem_limit_bytes=32 * 1024 * 1024),
    )(x2d, neg_mask, wqkvh, bqkvh, wo_h, params["bo"],
      params["ln1g"], params["ln1b"], params["w1"], params["b1"],
      params["w2"], params["b2"], params["ln2g"], params["ln2b"])

    # Lane-dense vocab projection: pad V to a multiple of 128, tile over it.
    TV = 128
    Vp = max(TV, ((V + TV - 1) // TV) * TV)
    out_w, out_b = params["out_w"], params["out_b"]
    if Vp != V:
        out_w = jnp.pad(out_w, ((0, 0), (0, Vp - V)))
        out_b = jnp.pad(out_b, ((0, 0), (0, Vp - V)))

    logits = pl.pallas_call(
        proj_kernel,
        out_shape=jax.ShapeDtypeStruct((M, Vp), jnp.float32),
        grid=(Vp // TV,),
        in_specs=[pl.BlockSpec((M, D), lambda j: (0, 0)),
                  pl.BlockSpec((D, TV), lambda j: (0, j)),
                  pl.BlockSpec((1, TV), lambda j: (0, j))],
        out_specs=pl.BlockSpec((M, TV), lambda j: (0, j)),
        compiler_params=pltpu.CompilerParams(
            dimension_semantics=("parallel",)),
    )(hidden, out_w, out_b)

    return logits[:, :V] if Vp != V else logits


def forward(input_ids, params, num_heads, max_seq_length=512):
    B, S = input_ids.shape
    S = min(S, max_seq_length)
    input_ids = input_ids[:, :S]
    # embedding lookup + positional embedding (plain JAX gather glue)
    tok = jnp.take(params["tok_emb"], input_ids, axis=0)
    x = (tok + params["pos_emb"][:S][None, :, :]).astype(jnp.float32)
    logits = fused_transformer(x.reshape(B * S, -1), params, num_heads, S)
    return logits.reshape(B, S, -1)


# ---------------------------------------------------------------------------
# Pure-JAX reference (same math) for a correctness check
# ---------------------------------------------------------------------------
def _layer_norm(x, g, b, eps=1e-5):
    mu = jnp.mean(x, axis=-1, keepdims=True)
    var = jnp.mean((x - mu) ** 2, axis=-1, keepdims=True)
    return (x - mu) * jax.lax.rsqrt(var + eps) * g + b


def _ref_layer(x, p, l, H):
    B, S, D = x.shape
    dh = D // H
    qkv = x @ p["wqkv"][l] + p["bqkv"][l]
    q, k, v = jnp.split(qkv, 3, axis=-1)
    r = lambda t: t.reshape(B, S, H, dh).transpose(0, 2, 1, 3)
    q, k, v = r(q), r(k), r(v)
    s = jnp.einsum("bhqd,bhkd->bhqk", q, k) / math.sqrt(dh)
    a = jnp.einsum("bhqk,bhkd->bhqd", jax.nn.softmax(s, axis=-1), v)
    a = a.transpose(0, 2, 1, 3).reshape(B, S, D) @ p["wo"][l] + p["bo"][l]
    x1 = _layer_norm(x + a, p["ln1g"][l], p["ln1b"][l])
    ff = jnp.maximum(x1 @ p["w1"][l] + p["b1"][l], 0.0) @ p["w2"][l] + p["b2"][l]
    return _layer_norm(x1 + ff, p["ln2g"][l], p["ln2b"][l])


def reference_forward(input_ids, params, H):
    S = input_ids.shape[1]
    x = jnp.take(params["tok_emb"], input_ids, axis=0) + params["pos_emb"][:S][None]
    for l in range(params["wqkv"].shape[0]):
        x = _ref_layer(x, params, l, H)
    return x @ params["out_w"] + params["out_b"]


# ---------------------------------------------------------------------------
# Deterministic parameter init (per-layer weights pre-stacked on a leading L)
# ---------------------------------------------------------------------------
def init_params(key, vocab, D, L, max_seq=512):
    F = 4 * D
    ks = jax.random.split(key, 7)
    n = lambda k, shape: 0.02 * jax.random.normal(k, shape, jnp.float32)
    return {
        "tok_emb": n(ks[0], (vocab, D)),
        "pos_emb": n(ks[1], (max_seq, D)),
        "wqkv": n(ks[2], (L, D, 3 * D)),
        "bqkv": jnp.zeros((L, 1, 3 * D), jnp.float32),
        "wo": n(ks[3], (L, D, D)),
        "bo": jnp.zeros((L, 1, D), jnp.float32),
        "ln1g": jnp.ones((L, 1, D), jnp.float32),
        "ln1b": jnp.zeros((L, 1, D), jnp.float32),
        "w1": n(ks[4], (L, D, F)),
        "b1": jnp.zeros((L, 1, F), jnp.float32),
        "w2": n(ks[5], (L, F, D)),
        "b2": jnp.zeros((L, 1, D), jnp.float32),
        "ln2g": jnp.ones((L, 1, D), jnp.float32),
        "ln2b": jnp.zeros((L, 1, D), jnp.float32),
        "out_w": n(ks[6], (D, vocab)),
        "out_b": jnp.zeros((1, vocab), jnp.float32),
    }


if __name__ == "__main__":
    VOCAB, HIDDEN, HEADS, LAYERS = 64, 32, 4, 2
    BATCH, SEQ = 2, 8

    key = jax.random.PRNGKey(0)
    pkey, ikey = jax.random.split(key)
    params = init_params(pkey, VOCAB, HIDDEN, LAYERS)
    input_ids = jax.random.randint(ikey, (BATCH, SEQ), 0, VOCAB, dtype=jnp.int32)

    logits = jax.block_until_ready(forward(input_ids, params, HEADS))
    assert logits.shape == (BATCH, SEQ, VOCAB)

    ref = reference_forward(input_ids, params, HEADS)
    max_err = float(jnp.max(jnp.abs(logits - ref)))
    assert jnp.allclose(logits, ref, atol=1e-4, rtol=1e-4), max_err

    print("KERNEL_OK")
</pallas_src>

<mosaic_0001>
module attributes {stable_mosaic.version = 11 : i64} {
  func.func @stack_kernel(%arg0: i32, %arg1: i32, %arg2: memref<16x32xf32, #tpu.memory_space<any>>, %arg3: memref<8x8xf32, #tpu.memory_space<vmem>>, %arg4: memref<1x12x32x8xf32, #tpu.memory_space<vmem>>, %arg5: memref<1x12x1x8xf32, #tpu.memory_space<vmem>>, %arg6: memref<1x4x8x32xf32, #tpu.memory_space<vmem>>, %arg7: memref<1x1x32xf32, #tpu.memory_space<vmem>>, %arg8: memref<1x1x32xf32, #tpu.memory_space<vmem>>, %arg9: memref<1x1x32xf32, #tpu.memory_space<vmem>>, %arg10: memref<1x32x128xf32, #tpu.memory_space<vmem>>, %arg11: memref<1x1x128xf32, #tpu.memory_space<vmem>>, %arg12: memref<1x128x32xf32, #tpu.memory_space<vmem>>, %arg13: memref<1x1x32xf32, #tpu.memory_space<vmem>>, %arg14: memref<1x1x32xf32, #tpu.memory_space<vmem>>, %arg15: memref<1x1x32xf32, #tpu.memory_space<vmem>>, %arg16: memref<8x32xf32, #tpu.memory_space<vmem>>, %arg17: memref<8x32xf32, #tpu.memory_space<vmem>>, %arg18: memref<!tpu.dma_semaphore, #tpu.memory_space<semaphore_mem>>) attributes {dimension_semantics = [#tpu.dimension_semantics<parallel>, #tpu.dimension_semantics<arbitrary>], iteration_bounds = array<i64: 2, 2>, scalar_prefetch = 0 : i64, scratch_operands = 2 : i64, tpu.core_type = #tpu.core_type<tc>, window_params = [{}, {pipeline_mode = #tpu.pipeline_mode<synchronous>, transform_indices = @transform_1, window_bounds = array<i64: 8, 8>}, {transform_indices = @transform_2, window_bounds = array<i64: 1, 12, 32, 8>}, {transform_indices = @transform_3, window_bounds = array<i64: 1, 12, 1, 8>}, {transform_indices = @transform_4, window_bounds = array<i64: 1, 4, 8, 32>}, {transform_indices = @transform_5, window_bounds = array<i64: 1, 1, 32>}, {transform_indices = @transform_6, window_bounds = array<i64: 1, 1, 32>}, {transform_indices = @transform_7, window_bounds = array<i64: 1, 1, 32>}, {transform_indices = @transform_8, window_bounds = array<i64: 1, 32, 128>}, {transform_indices = @transform_9, window_bounds = array<i64: 1, 1, 128>}, {transform_indices = @transform_10, window_bounds = array<i64: 1, 128, 32>}, {transform_indices = @transform_11, window_bounds = array<i64: 1, 1, 32>}, {transform_indices = @transform_12, window_bounds = array<i64: 1, 1, 32>}, {transform_indices = @transform_13, window_bounds = array<i64: 1, 1, 32>}, {transform_indices = @transform_14, window_bounds = array<i64: 8, 32>}]} {
    %c0_i32 = arith.constant 0 : i32
    %0 = arith.cmpi eq, %arg1, %c0_i32 : i32
    %1 = arith.extui %0 : i1 to i32
    %c0_i32_0 = arith.constant 0 : i32
    %2 = arith.cmpi ne, %1, %c0_i32_0 : i32
    scf.if %2 {
      %c8_i32 = arith.constant 8 : i32
      %115 = arith.muli %arg0, %c8_i32 : i32
      %116 = tpu.assume_multiple %115, 8 : i32
      %c0_i32_66 = arith.constant 0 : i32
      %117 = tpu.memref_slice %arg2[%116, %c0_i32_66] : memref<16x32xf32, #tpu.memory_space<any>> -> memref<8x32xf32, #tpu.memory_space<any>>
      tpu.enqueue_dma source(%117 : memref<8x32xf32, #tpu.memory_space<any>>) target(%arg17 : memref<8x32xf32, #tpu.memory_space<vmem>>) target_semaphore(%arg18 : memref<!tpu.dma_semaphore, #tpu.memory_space<semaphore_mem>>)
      %c0_i32_67 = arith.constant 0 : i32
      %118 = tpu.memref_slice %arg2[%116, %c0_i32_67] : memref<16x32xf32, #tpu.memory_space<any>> -> memref<8x32xf32, #tpu.memory_space<any>>
      tpu.wait_dma2 semaphore(%arg18 : memref<!tpu.dma_semaphore, #tpu.memory_space<semaphore_mem>>) src(%118 : memref<8x32xf32, #tpu.memory_space<any>>) dst(%arg17 : memref<8x32xf32, #tpu.memory_space<vmem>>)
    } else {
    }
    %c0 = arith.constant 0 : index
    %c0_1 = arith.constant 0 : index
    %3 = vector.load %arg17[%c0, %c0_1] : memref<8x32xf32, #tpu.memory_space<vmem>>, vector<8x32xf32>
    %4 = vector.shape_cast %3 : vector<8x32xf32> to vector<1x8x32xf32>
    %5 = vector.broadcast %4 : vector<1x8x32xf32> to vector<12x8x32xf32>
    %c0_2 = arith.constant 0 : index
    %c0_3 = arith.constant 0 : index
    %c0_4 = arith.constant 0 : index
    %c0_5 = arith.constant 0 : index
    %6 = vector.load %arg4[%c0_2, %c0_3, %c0_4, %c0_5] : memref<1x12x32x8xf32, #tpu.memory_space<vmem>>, vector<1x12x32x8xf32>
    %7 = vector.shape_cast %6 : vector<1x12x32x8xf32> to vector<12x32x8xf32>
    %cst = arith.constant dense<0.000000e+00> : vector<12x8x8xf32>
    %8 = tpu.matmul %5, %7, %cst {dimension_numbers = #tpu.dot_dimension_numbers<[2], [1], [1], [2], [0, 0, 0, 1, 1, 2], [0], [0]>} : vector<12x8x32xf32>, vector<12x32x8xf32>, vector<12x8x8xf32> -> vector<12x8x8xf32>
    %c0_6 = arith.constant 0 : index
    %c0_7 = arith.constant 0 : index
    %c0_8 = arith.constant 0 : index
    %c0_9 = arith.constant 0 : index
    %9 = vector.load %arg5[%c0_6, %c0_7, %c0_8, %c0_9] : memref<1x12x1x8xf32, #tpu.memory_space<vmem>>, vector<1x12x1x8xf32>
    %10 = vector.shape_cast %9 : vector<1x12x1x8xf32> to vector<12x1x8xf32>
    %11 = vector.broadcast %10 : vector<12x1x8xf32> to vector<12x8x8xf32>
    %12 = arith.addf %8, %11 : vector<12x8x8xf32>
    %13 = vector.extract_strided_slice %12 {offsets = [0, 0, 0], sizes = [4, 8, 8], strides = [1, 1, 1]} : vector<12x8x8xf32> to vector<4x8x8xf32>
    %14 = vector.extract_strided_slice %12 {offsets = [4, 0, 0], sizes = [4, 8, 8], strides = [1, 1, 1]} : vector<12x8x8xf32> to vector<4x8x8xf32>
    %15 = vector.extract_strided_slice %12 {offsets = [8, 0, 0], sizes = [4, 8, 8], strides = [1, 1, 1]} : vector<12x8x8xf32> to vector<4x8x8xf32>
    %cst_10 = arith.constant dense<0.000000e+00> : vector<4x8x8xf32>
    %16 = tpu.matmul %13, %14, %cst_10 {dimension_numbers = #tpu.dot_dimension_numbers<[2], [2], [1], [1], [0, 0, 0, 1, 1, 1], [0], [0]>} : vector<4x8x8xf32>, vector<4x8x8xf32>, vector<4x8x8xf32> -> vector<4x8x8xf32>
    %cst_11 = arith.constant 0.353553385 : f32
    %17 = vector.broadcast %cst_11 : f32 to vector<4x8x8xf32>
    %18 = arith.mulf %16, %17 : vector<4x8x8xf32>
    %c0_12 = arith.constant 0 : index
    %c0_13 = arith.constant 0 : index
    %19 = vector.load %arg3[%c0_12, %c0_13] : memref<8x8xf32, #tpu.memory_space<vmem>>, vector<8x8xf32>
    %20 = vector.shape_cast %19 : vector<8x8xf32> to vector<1x8x8xf32>
    %21 = vector.broadcast %20 : vector<1x8x8xf32> to vector<4x8x8xf32>
    %22 = arith.addf %18, %21 : vector<4x8x8xf32>
    %cst_14 = arith.constant dense<0xFF800000> : vector<4x8xf32>
    %23 = vector.multi_reduction <maximumf>, %22, %cst_14 [2] : vector<4x8x8xf32> to vector<4x8xf32>
    %24 = vector.shape_cast %23 : vector<4x8xf32> to vector<4x8x1xf32>
    %25 = vector.broadcast %24 : vector<4x8x1xf32> to vector<4x8x8xf32>
    %26 = arith.subf %22, %25 : vector<4x8x8xf32>
    %27 = math.exp %26 : vector<4x8x8xf32>
    %cst_15 = arith.constant dense<0.000000e+00> : vector<4x8xf32>
    %28 = vector.multi_reduction <add>, %27, %cst_15 [2] : vector<4x8x8xf32> to vector<4x8xf32>
    %29 = vector.shape_cast %28 : vector<4x8xf32> to vector<4x8x1xf32>
    %30 = vector.broadcast %29 : vector<4x8x1xf32> to vector<4x8x8xf32>
    %31 = arith.divf %27, %30 : vector<4x8x8xf32>
    %cst_16 = arith.constant dense<0.000000e+00> : vector<4x8x8xf32>
    %32 = tpu.matmul %31, %15, %cst_16 {dimension_numbers = #tpu.dot_dimension_numbers<[2], [1], [1], [2], [0, 0, 0, 1, 1, 2], [0], [0]>} : vector<4x8x8xf32>, vector<4x8x8xf32>, vector<4x8x8xf32> -> vector<4x8x8xf32>
    %c0_17 = arith.constant 0 : index
    %c0_18 = arith.constant 0 : index
    %c0_19 = arith.constant 0 : index
    %c0_20 = arith.constant 0 : index
    %33 = vector.load %arg6[%c0_17, %c0_18, %c0_19, %c0_20] : memref<1x4x8x32xf32, #tpu.memory_space<vmem>>, vector<1x4x8x32xf32>
    %34 = vector.shape_cast %33 : vector<1x4x8x32xf32> to vector<4x8x32xf32>
    %cst_21 = arith.constant dense<0.000000e+00> : vector<4x8x32xf32>
    %35 = tpu.matmul %32, %34, %cst_21 {dimension_numbers = #tpu.dot_dimension_numbers<[2], [1], [1], [2], [0, 0, 0, 1, 1, 2], [0], [0]>} : vector<4x8x8xf32>, vector<4x8x32xf32>, vector<4x8x32xf32> -> vector<4x8x32xf32>
    %cst_22 = arith.constant dense<0.000000e+00> : vector<8x32xf32>
    %36 = vector.multi_reduction <add>, %35, %cst_22 [0] : vector<4x8x32xf32> to vector<8x32xf32>
    %c0_23 = arith.constant 0 : index
    %c0_24 = arith.constant 0 : index
    %c0_25 = arith.constant 0 : index
    %37 = vector.load %arg7[%c0_23, %c0_24, %c0_25] : memref<1x1x32xf32, #tpu.memory_space<vmem>>, vector<1x1x32xf32>
    %38 = vector.shape_cast %37 : vector<1x1x32xf32> to vector<1x32xf32>
    %39 = vector.broadcast %38 : vector<1x32xf32> to vector<8x32xf32>
    %40 = arith.addf %36, %39 : vector<8x32xf32>
    %41 = arith.addf %3, %40 : vector<8x32xf32>
    %c0_26 = arith.constant 0 : index
    %c0_27 = arith.constant 0 : index
    %c0_28 = arith.constant 0 : index
    %42 = vector.load %arg8[%c0_26, %c0_27, %c0_28] : memref<1x1x32xf32, #tpu.memory_space<vmem>>, vector<1x1x32xf32>
    %43 = vector.shape_cast %42 : vector<1x1x32xf32> to vector<1x32xf32>
    %c0_29 = arith.constant 0 : index
    %c0_30 = arith.constant 0 : index
    %c0_31 = arith.constant 0 : index
    %44 = vector.load %arg9[%c0_29, %c0_30, %c0_31] : memref<1x1x32xf32, #tpu.memory_space<vmem>>, vector<1x1x32xf32>
    %45 = vector.shape_cast %44 : vector<1x1x32xf32> to vector<1x32xf32>
    %cst_32 = arith.constant dense<0.000000e+00> : vector<8xf32>
    %46 = vector.multi_reduction <add>, %41, %cst_32 [1] : vector<8x32xf32> to vector<8xf32>
    %47 = vector.shape_cast %46 : vector<8xf32> to vector<8x1xf32>
    %cst_33 = arith.constant 3.200000e+01 : f32
    %48 = vector.broadcast %cst_33 : f32 to vector<8x1xf32>
    %49 = arith.divf %47, %48 : vector<8x1xf32>
    %50 = vector.broadcast %49 : vector<8x1xf32> to vector<8x32xf32>
    %51 = arith.subf %41, %50 : vector<8x32xf32>
    %52 = arith.mulf %51, %51 : vector<8x32xf32>
    %cst_34 = arith.constant dense<0.000000e+00> : vector<8xf32>
    %53 = vector.multi_reduction <add>, %52, %cst_34 [1] : vector<8x32xf32> to vector<8xf32>
    %54 = vector.shape_cast %53 : vector<8xf32> to vector<8x1xf32>
    %cst_35 = arith.constant 3.200000e+01 : f32
    %55 = vector.broadcast %cst_35 : f32 to vector<8x1xf32>
    %56 = arith.divf %54, %55 : vector<8x1xf32>
    %57 = vector.broadcast %49 : vector<8x1xf32> to vector<8x32xf32>
    %58 = arith.subf %41, %57 : vector<8x32xf32>
    %cst_36 = arith.constant 9.99999974E-6 : f32
    %59 = vector.broadcast %cst_36 : f32 to vector<8x1xf32>
    %60 = arith.addf %56, %59 : vector<8x1xf32>
    %61 = math.rsqrt %60 : vector<8x1xf32>
    %62 = vector.broadcast %61 : vector<8x1xf32> to vector<8x32xf32>
    %63 = arith.mulf %58, %62 : vector<8x32xf32>
    %64 = vector.broadcast %43 : vector<1x32xf32> to vector<8x32xf32>
    %65 = arith.mulf %63, %64 : vector<8x32xf32>
    %66 = vector.broadcast %45 : vector<1x32xf32> to vector<8x32xf32>
    %67 = arith.addf %65, %66 : vector<8x32xf32>
    %c0_37 = arith.constant 0 : index
    %c0_38 = arith.constant 0 : index
    %c0_39 = arith.constant 0 : index
    %68 = vector.load %arg10[%c0_37, %c0_38, %c0_39] : memref<1x32x128xf32, #tpu.memory_space<vmem>>, vector<1x32x128xf32>
    %69 = vector.shape_cast %68 : vector<1x32x128xf32> to vector<32x128xf32>
    %cst_40 = arith.constant dense<0.000000e+00> : vector<8x128xf32>
    %70 = tpu.matmul %67, %69, %cst_40 {dimension_numbers = #tpu.dot_dimension_numbers<[1], [0], [0], [1], [0, 0, 1, 1], [], []>} : vector<8x32xf32>, vector<32x128xf32>, vector<8x128xf32> -> vector<8x128xf32>
    %c0_41 = arith.constant 0 : index
    %c0_42 = arith.constant 0 : index
    %c0_43 = arith.constant 0 : index
    %71 = vector.load %arg11[%c0_41, %c0_42, %c0_43] : memref<1x1x128xf32, #tpu.memory_space<vmem>>, vector<1x1x128xf32>
    %72 = vector.shape_cast %71 : vector<1x1x128xf32> to vector<1x128xf32>
    %73 = vector.broadcast %72 : vector<1x128xf32> to vector<8x128xf32>
    %74 = arith.addf %70, %73 : vector<8x128xf32>
    %cst_44 = arith.constant 0.000000e+00 : f32
    %75 = vector.broadcast %cst_44 : f32 to vector<8x128xf32>
    %76 = arith.maximumf %74, %75 : vector<8x128xf32>
    %c0_45 = arith.constant 0 : index
    %c0_46 = arith.constant 0 : index
    %c0_47 = arith.constant 0 : index
    %77 = vector.load %arg12[%c0_45, %c0_46, %c0_47] : memref<1x128x32xf32, #tpu.memory_space<vmem>>, vector<1x128x32xf32>
    %78 = vector.shape_cast %77 : vector<1x128x32xf32> to vector<128x32xf32>
    %cst_48 = arith.constant dense<0.000000e+00> : vector<8x32xf32>
    %79 = tpu.matmul %76, %78, %cst_48 {dimension_numbers = #tpu.dot_dimension_numbers<[1], [0], [0], [1], [0, 0, 1, 1], [], []>} : vector<8x128xf32>, vector<128x32xf32>, vector<8x32xf32> -> vector<8x32xf32>
    %c0_49 = arith.constant 0 : index
    %c0_50 = arith.constant 0 : index
    %c0_51 = arith.constant 0 : index
    %80 = vector.load %arg13[%c0_49, %c0_50, %c0_51] : memref<1x1x32xf32, #tpu.memory_space<vmem>>, vector<1x1x32xf32>
    %81 = vector.shape_cast %80 : vector<1x1x32xf32> to vector<1x32xf32>
    %82 = vector.broadcast %81 : vector<1x32xf32> to vector<8x32xf32>
    %83 = arith.addf %79, %82 : vector<8x32xf32>
    %84 = arith.addf %67, %83 : vector<8x32xf32>
    %c0_52 = arith.constant 0 : index
    %c0_53 = arith.constant 0 : index
    %c0_54 = arith.constant 0 : index
    %85 = vector.load %arg14[%c0_52, %c0_53, %c0_54] : memref<1x1x32xf32, #tpu.memory_space<vmem>>, vector<1x1x32xf32>
    %86 = vector.shape_cast %85 : vector<1x1x32xf32> to vector<1x32xf32>
    %c0_55 = arith.constant 0 : index
    %c0_56 = arith.constant 0 : index
    %c0_57 = arith.constant 0 : index
    %87 = vector.load %arg15[%c0_55, %c0_56, %c0_57] : memref<1x1x32xf32, #tpu.memory_space<vmem>>, vector<1x1x32xf32>
    %88 = vector.shape_cast %87 : vector<1x1x32xf32> to vector<1x32xf32>
    %cst_58 = arith.constant dense<0.000000e+00> : vector<8xf32>
    %89 = vector.multi_reduction <add>, %84, %cst_58 [1] : vector<8x32xf32> to vector<8xf32>
    %90 = vector.shape_cast %89 : vector<8xf32> to vector<8x1xf32>
    %cst_59 = arith.constant 3.200000e+01 : f32
    %91 = vector.broadcast %cst_59 : f32 to vector<8x1xf32>
    %92 = arith.divf %90, %91 : vector<8x1xf32>
    %93 = vector.broadcast %92 : vector<8x1xf32> to vector<8x32xf32>
    %94 = arith.subf %84, %93 : vector<8x32xf32>
    %95 = arith.mulf %94, %94 : vector<8x32xf32>
    %cst_60 = arith.constant dense<0.000000e+00> : vector<8xf32>
    %96 = vector.multi_reduction <add>, %95, %cst_60 [1] : vector<8x32xf32> to vector<8xf32>
    %97 = vector.shape_cast %96 : vector<8xf32> to vector<8x1xf32>
    %cst_61 = arith.constant 3.200000e+01 : f32
    %98 = vector.broadcast %cst_61 : f32 to vector<8x1xf32>
    %99 = arith.divf %97, %98 : vector<8x1xf32>
    %100 = vector.broadcast %92 : vector<8x1xf32> to vector<8x32xf32>
    %101 = arith.subf %84, %100 : vector<8x32xf32>
    %cst_62 = arith.constant 9.99999974E-6 : f32
    %102 = vector.broadcast %cst_62 : f32 to vector<8x1xf32>
    %103 = arith.addf %99, %102 : vector<8x1xf32>
    %104 = math.rsqrt %103 : vector<8x1xf32>
    %105 = vector.broadcast %104 : vector<8x1xf32> to vector<8x32xf32>
    %106 = arith.mulf %101, %105 : vector<8x32xf32>
    %107 = vector.broadcast %86 : vector<1x32xf32> to vector<8x32xf32>
    %108 = arith.mulf %106, %107 : vector<8x32xf32>
    %109 = vector.broadcast %88 : vector<1x32xf32> to vector<8x32xf32>
    %110 = arith.addf %108, %109 : vector<8x32xf32>
    %c0_63 = arith.constant 0 : index
    %c0_64 = arith.constant 0 : index
    %111 = vector.load %arg17[%c0_63, %c0_64] : memref<8x32xf32, #tpu.memory_space<vmem>>, vector<8x32xf32>
    tpu.vector_store %arg17[%c0_63, %c0_64], %110 {strides = array<i32>} : memref<8x32xf32, #tpu.memory_space<vmem>>, vector<8x32xf32>,
    %c1_i32 = arith.constant 1 : i32
    %112 = arith.cmpi eq, %arg1, %c1_i32 : i32
    %113 = arith.extui %112 : i1 to i32
    %c0_i32_65 = arith.constant 0 : i32
    %114 = arith.cmpi ne, %113, %c0_i32_65 : i32
    scf.if %114 {
      %c0_66 = arith.constant 0 : index
      %c0_67 = arith.constant 0 : index
      %115 = vector.load %arg16[%c0_66, %c0_67] : memref<8x32xf32, #tpu.memory_space<vmem>>, vector<8x32xf32>
      tpu.vector_store %arg16[%c0_66, %c0_67], %110 {strides = array<i32>} : memref<8x32xf32, #tpu.memory_space<vmem>>, vector<8x32xf32>,
    } else {
    }
    return
  }
  func.func @transform_1(%arg0: i32, %arg1: i32) -> (i32, i32) {
    %c0_i32 = arith.constant 0 : i32
    %c0_i32_0 = arith.constant 0 : i32
    %c0_i32_1 = arith.constant 0 : i32
    return %c0_i32, %c0_i32_0 : i32, i32
  }
  func.func @transform_2(%arg0: i32, %arg1: i32) -> (i32, i32, i32, i32) {
    %c0_i32 = arith.constant 0 : i32
    %c0_i32_0 = arith.constant 0 : i32
    %c0_i32_1 = arith.constant 0 : i32
    %c0_i32_2 = arith.constant 0 : i32
    return %arg1, %c0_i32, %c0_i32_0, %c0_i32_1 : i32, i32, i32, i32
  }
  func.func @transform_3(%arg0: i32, %arg1: i32) -> (i32, i32, i32, i32) {
    %c0_i32 = arith.constant 0 : i32
    %c0_i32_0 = arith.constant 0 : i32
    %c0_i32_1 = arith.constant 0 : i32
    %c0_i32_2 = arith.constant 0 : i32
    return %arg1, %c0_i32, %c0_i32_0, %c0_i32_1 : i32, i32, i32, i32
  }
  func.func @transform_4(%arg0: i32, %arg1: i32) -> (i32, i32, i32, i32) {
    %c0_i32 = arith.constant 0 : i32
    %c0_i32_0 = arith.constant 0 : i32
    %c0_i32_1 = arith.constant 0 : i32
    %c0_i32_2 = arith.constant 0 : i32
    return %arg1, %c0_i32, %c0_i32_0, %c0_i32_1 : i32, i32, i32, i32
  }
  func.func @transform_5(%arg0: i32, %arg1: i32) -> (i32, i32, i32) {
    %c0_i32 = arith.constant 0 : i32
    %c0_i32_0 = arith.constant 0 : i32
    %c0_i32_1 = arith.constant 0 : i32
    return %arg1, %c0_i32, %c0_i32_0 : i32, i32, i32
  }
  func.func @transform_6(%arg0: i32, %arg1: i32) -> (i32, i32, i32) {
    %c0_i32 = arith.constant 0 : i32
    %c0_i32_0 = arith.constant 0 : i32
    %c0_i32_1 = arith.constant 0 : i32
    return %arg1, %c0_i32, %c0_i32_0 : i32, i32, i32
  }
  func.func @transform_7(%arg0: i32, %arg1: i32) -> (i32, i32, i32) {
    %c0_i32 = arith.constant 0 : i32
    %c0_i32_0 = arith.constant 0 : i32
    %c0_i32_1 = arith.constant 0 : i32
    return %arg1, %c0_i32, %c0_i32_0 : i32, i32, i32
  }
  func.func @transform_8(%arg0: i32, %arg1: i32) -> (i32, i32, i32) {
    %c0_i32 = arith.constant 0 : i32
    %c0_i32_0 = arith.constant 0 : i32
    %c0_i32_1 = arith.constant 0 : i32
    return %arg1, %c0_i32, %c0_i32_0 : i32, i32, i32
  }
  func.func @transform_9(%arg0: i32, %arg1: i32) -> (i32, i32, i32) {
    %c0_i32 = arith.constant 0 : i32
    %c0_i32_0 = arith.constant 0 : i32
    %c0_i32_1 = arith.constant 0 : i32
    return %arg1, %c0_i32, %c0_i32_0 : i32, i32, i32
  }
  func.func @transform_10(%arg0: i32, %arg1: i32) -> (i32, i32, i32) {
    %c0_i32 = arith.constant 0 : i32
    %c0_i32_0 = arith.constant 0 : i32
    %c0_i32_1 = arith.constant 0 : i32
    return %arg1, %c0_i32, %c0_i32_0 : i32, i32, i32
  }
  func.func @transform_11(%arg0: i32, %arg1: i32) -> (i32, i32, i32) {
    %c0_i32 = arith.constant 0 : i32
    %c0_i32_0 = arith.constant 0 : i32
    %c0_i32_1 = arith.constant 0 : i32
    return %arg1, %c0_i32, %c0_i32_0 : i32, i32, i32
  }
  func.func @transform_12(%arg0: i32, %arg1: i32) -> (i32, i32, i32) {
    %c0_i32 = arith.constant 0 : i32
    %c0_i32_0 = arith.constant 0 : i32
    %c0_i32_1 = arith.constant 0 : i32
    return %arg1, %c0_i32, %c0_i32_0 : i32, i32, i32
  }
  func.func @transform_13(%arg0: i32, %arg1: i32) -> (i32, i32, i32) {
    %c0_i32 = arith.constant 0 : i32
    %c0_i32_0 = arith.constant 0 : i32
    %c0_i32_1 = arith.constant 0 : i32
    return %arg1, %c0_i32, %c0_i32_0 : i32, i32, i32
  }
  func.func @transform_14(%arg0: i32, %arg1: i32) -> (i32, i32) {
    %c0_i32 = arith.constant 0 : i32
    %c0_i32_0 = arith.constant 0 : i32
    return %arg0, %c0_i32 : i32, i32
  }
}

</mosaic_0001>

<bundles_post_ra>
// kernel: tpu_custom_call.1
= control target key start
LH: loop header
LB: loop body
LE: loop exit
PB: predicated region body
PF: predicated region fallthrough
CT: control target
= control target key end

     0   :  { %s4350_s0 = inlined_call_operand.vmem [shape: f32[16,32], index: 0, kind: input, shape index: {}]   ;;  %s4351_s1 = inlined_call_operand.vmem [shape: f32[8,8], index: 1, kind: input, shape index: {}]   ;;  %s4352_s2 = inlined_call_operand.vmem [shape: f32[2,12,32,8], index: 2, kind: input, shape index: {}]   ;;  %s4353_s3 = inlined_call_operand.vmem [shape: f32[2,12,1,8], index: 3, kind: input, shape index: {}]   ;;  %s4354_s4 = inlined_call_operand.vmem [shape: f32[2,4,8,32], index: 4, kind: input, shape index: {}]   ;;  %s4355_s5 = inlined_call_operand.vmem [shape: f32[2,1,32], index: 5, kind: input, shape index: {}]   ;;  %s4356_s6 = inlined_call_operand.vmem [shape: f32[2,1,32], index: 6, kind: input, shape index: {}]   ;;  %s4357_s7 = inlined_call_operand.vmem [shape: f32[2,1,32], index: 7, kind: input, shape index: {}]   ;;  %s4358_s8 = inlined_call_operand.vmem [shape: f32[2,32,128], index: 8, kind: input, shape index: {}]   ;;  %s4359_s9 = inlined_call_operand.vmem [shape: f32[2,1,128], index: 9, kind: input, shape index: {}]   ;;  %s4360_s10 = inlined_call_operand.vmem [shape: f32[2,128,32], index: 10, kind: input, shape index: {}]   ;;  %s4361_s11 = inlined_call_operand.vmem [shape: f32[2,1,32], index: 11, kind: input, shape index: {}]   ;;  %s4362_s12 = inlined_call_operand.vmem [shape: f32[2,1,32], index: 12, kind: input, shape index: {}]   ;;  %s4363_s13 = inlined_call_operand.vmem [shape: f32[2,1,32], index: 13, kind: input, shape index: {}]   ;;  %s4364_s14 = inlined_call_operand.hbm [shape: f32[16,32], index: 14, kind: output, shape index: {}]  }
   0x1   :  { %4380 = sst [smem:[#allocation23_spill]] %s4350_s0 }
   0x2   :  { %4381 = sst [smem:[#allocation24_spill]] %s4351_s1 }
   0x3   :  { %4382 = sst [smem:[#allocation25_spill]] %s4352_s2 }
   0x4   :  { %4383 = sst [smem:[#allocation26_spill]] %s4353_s3 }
   0x5   :  { %4384 = sst [smem:[#allocation27_spill]] %s4354_s4 }
   0x6   :  { %4385 = sst [smem:[#allocation28_spill]] %s4358_s8 }
   0x7   :  { %4386 = sst [smem:[#allocation29_spill]] %s4364_s14 }
   0x8   :  { %19 = vsyncpa [#allocation5], 0 }
   0x9   :  { %21 = vsyncpa [#allocation5 + $0x1], 0  ;;  %s3863_s29 = smov 0   ;;  %s3865_s30 = smov 0  }
   0xa   :  { %s3867_s15 = smov 0   ;;  %s3869_s16 = smov 0  }
   0xb   :  { %s3871_s17 = smov 0   ;;  %s3873_s18 = smov 0  }
   0xc   :  { %s3875_s19 = smov 0   ;;  %s3877_s20 = smov 0  }
   0xd LB: > { %4387 = sst [smem:[#allocation9_spill]] %s3754_s29  ;;  %s3072_s21 = sadd.s32 4294967295, %s3782_s20   ;;  %s3782_s20 = sphi %s3877_s20, %s27_s20   ;;  %s3778_s19 = sphi %s3875_s19, %s4432_s19   ;;  %s3774_s18 = sphi %s3873_s18, %s4431_s18   ;;  %s3770_s17 = sphi %s3871_s17, %s4430_s17   ;;  %s3766_s16 = sphi %s3869_s16, %s4429_s16   ;;  %s3762_s15 = sphi %s3867_s15, %s4428_s15   ;;  %s3758_s30 = sphi %s3865_s30, %s4427_s30   ;;  %s3754_s29 = sphi %s3863_s29, %s4426_s29  }
   0xe   : > { %4388 = sst [smem:[#allocation10_spill]] %s3758_s30  ;;  %s3073_s22 = sadd.s32 4294967294, %s3782_s20  }
   0xf   : > { %4389 = sst [smem:[#allocation11_spill]] %s3762_s15  ;;  %s36_s23 = sadd.s32 1, %s3774_s18 }
  0x10   : > { %4390 = sst [smem:[#allocation12_spill]] %s3766_s16  ;;  %p37_p0 = scmp.ge.s32.totalorder %s36_s23, 2 }
  0x11   : > { %4391 = sst [smem:[#allocation13_spill]] %s3770_s17  ;;  %s39_s24 = sadd.s32 1, %s3778_s19 }
  0x12   : > { %4392 = sst [smem:[#allocation14_spill]] %s3774_s18  ;;  %p389_p1 = scmp.ne.s32.totalorder %s3762_s15, %s3758_s30 }
  0x13   : > { %4393 = sst [smem:[#allocation15_spill]] %s3778_s19  ;;  %p390_p2 = scmp.eq.s32.totalorder %s3072_s21, 3 }
  0x14   : > { %4394 = sst [smem:[#allocation16_spill]] %s3782_s20  ;;  %s4434_s23 = smov (%p37_p0, %s36_s23), 0 }
  0x15   : > { %4395 = sst [smem:[#allocation17_spill]] %s4434_s23  ;;  %s4436_s24 = smov (!%p37_p0, %s39_s24), %s3778_s19 }
  0x16   : > { %p3912_p3 = por %p390_p2, %p389_p1  ;;  %p395_p4 = scmp.ne.s32.totalorder %s3758_s30, %s3754_s29 }
  0x17   : > { %p41_p5 = scmp.ge.s32.totalorder %s4436_s24, 2  ;;  %p396_p6 = scmp.eq.s32.totalorder %s3073_s22, 3 }
  0x18   : > { %s4396_s25 = scalar_select %p3912_p3, 1, 0 }
  0x19   : > { %p3076_p7 = scmp.ge.s32.totalorder %s3782_s20, 1  ;;  %p498_p8 = scmp.lt.s32.totalorder %s3782_s20, 5 }
  0x1a   : > { %4397 = sst [smem:[#allocation18_spill]] %s4396_s25  ;;  %s4438_s24 = smov (%p41_p5, %s4436_s24), 0 }
  0x1b   : > { %4398 = sst [smem:[#allocation19_spill]] %s4438_s24  ;;  %p3922_p9 = por %p396_p6, %p395_p4 }
  0x1c   : > { %p499_p10 = pnand %p3076_p7, %p498_p8  ;;  %s376_s27 = ssub.s32 %s3778_s19, %s4438_s24 }
  0x1d   : > { %s4399_s26 = scalar_select %p3922_p9, 1, 0 }
  0x1e   : > { %s379_s28 = sadd.s32 1, %s3762_s15  ;;  %p377_p11 = scmp.eq.s32.totalorder %s376_s27, 0 }
  0x1f   : > { %4400 = sst [smem:[#allocation20_spill]] %s4399_s26  ;;  %502 = sbr.rel (%p499_p10) target bundleno = 2378 (0x94a), region = 72 }
  0x20   : > { %s3930_s21 = scalar_select %p377_p11, %s3762_s15, %s379_s28  }
  0x22   : > { %4401 = sst [smem:[#allocation21_spill]] %s3930_s21 }
  0x26   : > { %s4368_s22 = sand.u32 1, %s3758_s30   ;;  %p582_p12 = scmp.lt.s32.totalorder %s3766_s16, 1 }
  0x27   : > { %s3936_s23 = sshll.u32 %s4368_s22, 3  ;;  %s4402_s4 = sld [smem:[#allocation27_spill]] }
  0x28   : > { %s3939_s18 = scalar_select %p582_p12, %s3766_s16, 1 }
  0x29   : > { %s4404_s2 = sld [smem:[#allocation25_spill]]  ;;  %s4405_s3 = sld [smem:[#allocation26_spill]] }
  0x2a   : > { %s3590_s27 = smul.u32 384, %s3939_s18  ;;  %s3141_s28 = sshll.u32 %s3939_s18, 5 }
  0x2b   : > { %s3591_s24 = smul.u32 12, %s3939_s18  ;;  %s4406_s8 = sld [smem:[#allocation28_spill]] }
  0x2c   : > { %s3143_s1 = sshll.u32 %s3939_s18, 7  ;;  %s623_s15 = scalar_lea.vmem %s4362_s12, %s3939_s18 }
  0x2d   : > { %s3947_s21 = scalar_lea.vmem %s4402_s4, %s3141_s28  ;;  %s620_s4 = scalar_lea.vmem %s4361_s11, %s3939_s18 }
  0x2e   : > { %4403 = sst [smem:[#allocation22_spill]] %s3947_s21  ;;  %s626_s19 = scalar_lea.vmem %s4363_s13, %s3939_s18 }
  0x2f   : > { %s3952_s29 = scalar_lea.vmem %s4404_s2, %s3590_s27  ;;  %s3961_s0 = scalar_lea.vmem %s4405_s3, %s3591_s24 }
  0x30   : > { %s3984_s2 = scalar_lea.vmem %s4360_s10, %s3143_s1  ;;  %s581_s14 = scalar_lea.vmem [#allocation4], %s3936_s23 }
  0x31   : > { %s3974_s27 = scalar_lea.vmem %s4406_s8, %s3141_s28  ;;  %s4407_s20 = sld [smem:[#allocation12_spill]] }
  0x37   : > { %p3085_p13 = scmp.ne.s32.totalorder %s4407_s20, 0 }
  0x38   : > { %s4408_s25 = sld [smem:[#allocation13_spill]] (!%p3085_p13) }
  0x39   : > { %630 = sbr.rel (%p3085_p13) target bundleno = 69 (0x45), region = 76  ;;  %s4409_s3 = sld [smem:[#allocation23_spill]] (!%p3085_p13) }
  0x3e   : > { %s3086_s30 = sshll.u32 (!%p3085_p13), %s4408_s25, 3 }
  0x3f   : > { %s632_s8 = scalar_lea.vmem (!%p3085_p13), %s4409_s3, %s3086_s30 }
  0x40   : > { %v665_v0 = vld [vmem:[%s632_s8] sm:$0xff] }
  0x41   : > { %666 = vst [vmem:[#allocation2] sm:$0xff] %v665_v0 }
  0x42   : > { %674 = vsyncadd [#allocation3], 128 }
  0x43   : > { %3746 = dma.done.wait [#allocation3], 128 }
  0x44   : > { %3747 = vsyncadd [#allocation3], 4294967168 }
  0x45 PF: > { %v679_v1 = vld [vmem:[%s3952_s29] sm:$0xff]  ;;  %v680_v2 = vld [vmem:[%s3952_s29 + $0x8] sm:$0xff]  ;;  %v3784_v4 = vmov 0.0|0.0   ;;  %v681_v7 = vld [vmem:[%s3952_s29 + $0x10] sm:$0xff]  ;;  %vm3785_vm0 = vmmov 0   ;;  %v3786_v12 = vmov 0.0   ;;  %s4412_s16 = scalar_lea.vmem %s4355_s5, %s3939_s18  ;;  %s4413_s22 = scalar_lea.vmem %s4356_s6, %s3939_s18 }
  0x46   : > { %v691_v3 = vld [vmem:[%s3952_s29 + $0x60] sm:$0xff]  ;;  %3488 = vmatprep.subr.bf16.mxu0 %v3784_v4  ;;  %v3489_v5 = vpack.c.bf16 %v680_v2, %v679_v1  ;;  %3506 = vmatprep.subr.bf16.mxu1 %v3784_v4  ;;  %v692_v6 = vld [vmem:[%s3952_s29 + $0x68] sm:$0xff]  ;;  %v682_v8 = vld [vmem:[%s3952_s29 + $0x18] sm:$0xff]  ;;  %vm811_vm1 = vcmask 261120   ;;  %vm1655_vm2 = vcmask 64512   ;;  %s4411_s25 = sld [smem:[#allocation22_spill]]  ;;  %s4414_s20 = scalar_lea.vmem %s4357_s7, %s3939_s18 }
  0x47   : > { %v3507_v9 = vpack.c.bf16 %v692_v6, %v691_v3  ;;  %v693_v10 = vld [vmem:[%s3952_s29 + $0x70] sm:$0xff]  ;;  %v694_v11 = vld [vmem:[%s3952_s29 + $0x78] sm:$0xff]  ;;  %3258 = vmatprep.mubr.msk.f32.mxu0 %vm3785_vm0, %v3786_v12  ;;  %3291 = vmatprep.mubr.msk.f32.mxu1 %vm3785_vm0, %v3786_v12  ;;  %v3492_v13 = vpack.c.bf16 %v682_v8, %v681_v7  ;;  %v683_v15 = vld [vmem:[%s3952_s29 + $0x20] sm:$0xff]  ;;  %s4415_s24 = scalar_lea.vmem %s4359_s9, %s3939_s18 }
  0x48   : > { %3490 = vmatpush3.bf16.msra.mxu0 %v3489_v5  ;;  %v3510_v14 = vpack.c.bf16 %v694_v11, %v693_v10  ;;  %v684_v16 = vld [vmem:[%s3952_s29 + $0x28] sm:$0xff]  ;;  %v699_v17 = vld [vmem:[%s3952_s29 + $0xa0] sm:$0xff]  ;;  %v685_v22 = vld [vmem:[%s3952_s29 + $0x30] sm:$0xff] }
  0x49   : > { %3508 = vmatpush3.bf16.msra.mxu1 %v3507_v9  ;;  %3491 = vmatprep.subr.bf16.mxu0 %v3784_v4  ;;  %v700_v18 = vld [vmem:[%s3952_s29 + $0xa8] sm:$0xff]  ;;  %v4024_v19 = vld [vmem:[#allocation2] sm:$0xff]  ;;  %v3495_v20 = vpack.c.bf16 %v684_v16, %v683_v15  ;;  %v686_v23 = vld [vmem:[%s3952_s29 + $0x38] sm:$0xff] }
  0x4a   : > { %3509 = vmatprep.subr.bf16.mxu1 %v3784_v4  ;;  %v3519_v21 = vpack.c.bf16 %v700_v18, %v699_v17  ;;  %v701_v24 = vld [vmem:[%s3952_s29 + $0xb0] sm:$0xff]  ;;  %v702_v25 = vld [vmem:[%s3952_s29 + $0xb8] sm:$0xff]  ;;  %v3498_v26 = vpack.c.bf16 %v686_v23, %v685_v22  ;;  %v687_v28 = vld [vmem:[%s3952_s29 + $0x40] sm:$0xff] }
  0x4b   : > { %v3522_v27 = vpack.c.bf16 %v702_v25, %v701_v24  ;;  %v688_v29 = vld [vmem:[%s3952_s29 + $0x48] sm:$0xff]  ;;  %v707_v30 = vld [vmem:[%s3952_s29 + $0xe0] sm:$0xff]  ;;  %v689_v34 = vld [vmem:[%s3952_s29 + $0x50] sm:$0xff] }
  0x4c   : > { %3493 = vmatpush3.bf16.msra.mxu0 %v3492_v13  ;;  %v708_v31 = vld [vmem:[%s3952_s29 + $0xe8] sm:$0xff]  ;;  %v3501_v32 = vpack.c.bf16 %v688_v29, %v687_v28  ;;  %v690_v35 = vld [vmem:[%s3952_s29 + $0x58] sm:$0xff]  ;;  %v709_v36 = vld [vmem:[%s3952_s29 + $0xf0] sm:$0xff] }
  0x4d   : > { %3511 = vmatpush3.bf16.msra.mxu1 %v3510_v14  ;;  %3494 = vmatprep.subr.bf16.mxu0 %v3784_v4  ;;  %v3531_v33 = vpack.c.bf16 %v708_v31, %v707_v30  ;;  %v710_v37 = vld [vmem:[%s3952_s29 + $0xf8] sm:$0xff]  ;;  %v3504_v38 = vpack.c.bf16 %v690_v35, %v689_v34  ;;  %v695_v40 = vld [vmem:[%s3952_s29 + $0x80] sm:$0xff]  ;;  %v696_v41 = vld [vmem:[%s3952_s29 + $0x88] sm:$0xff] }
  0x4e   : > { %3518 = vmatprep.subr.bf16.mxu1 %v3784_v4  ;;  %v3534_v39 = vpack.c.bf16 %v710_v37, %v709_v36  ;;  %v715_v42 = vld [vmem:[%s3952_s29 + $0x120] sm:$0xff]  ;;  %v716_v43 = vld [vmem:[%s3952_s29 + $0x128] sm:$0xff]  ;;  %v3513_v44 = vpack.c.bf16 %v696_v41, %v695_v40  ;;  %v697_v45 = vld [vmem:[%s3952_s29 + $0x90] sm:$0xff] }
  0x4f   : > { %3259 = vmatmul.mubr.msk.f32.vlgmr.msra.gmra.mrb[0].mxu0 %vm811_vm1, %v4024_v19  ;;  %v698_v46 = vld [vmem:[%s3952_s29 + $0x98] sm:$0xff]  ;;  %v3543_v47 = vpack.c.bf16 %v716_v43, %v715_v42  ;;  %v703_v49 = vld [vmem:[%s3952_s29 + $0xc0] sm:$0xff]  ;;  %v704_v50 = vld [vmem:[%s3952_s29 + $0xc8] sm:$0xff] }
  0x50   : > { %3496 = vmatpush3.bf16.msra.mxu0 %v3495_v20  ;;  %3292 = vmatmul.mubr.msk.f32.vlgmr.msra.gmra.mrb[0].mxu1 %vm811_vm1, %v4024_v19  ;;  %v3516_v48 = vpack.c.bf16 %v698_v46, %v697_v45  ;;  %v3525_v51 = vpack.c.bf16 %v704_v50, %v703_v49  ;;  %v705_v52 = vld [vmem:[%s3952_s29 + $0xd0] sm:$0xff]  ;;  %v706_v53 = vld [vmem:[%s3952_s29 + $0xd8] sm:$0xff]  ;;  %v711_v58 = vld [vmem:[%s3952_s29 + $0x100] sm:$0xff] }
  0x51   : > { %3520 = vmatpush3.bf16.msra.mxu1 %v3519_v21  ;;  %3497 = vmatprep.subr.bf16.mxu0 %v3784_v4  ;;  %v3528_v54 = vpack.c.bf16 %v706_v53, %v705_v52  ;;  %v717_v55 = vld [vmem:[%s3952_s29 + $0x130] sm:$0xff]  ;;  %v718_v56 = vld [vmem:[%s3952_s29 + $0x138] sm:$0xff]  ;;  %v712_v59 = vld [vmem:[%s3952_s29 + $0x108] sm:$0xff] }
  0x52   : > { %3521 = vmatprep.subr.bf16.mxu1 %v3784_v4  ;;  %3269 = vmatprep.mubr.msk.f32.mxu0 %vm3785_vm0, %v3786_v12  ;;  %v3546_v57 = vpack.c.bf16 %v718_v56, %v717_v55  ;;  %v723_v60 = vld [vmem:[%s3952_s29 + $0x160] sm:$0xff]  ;;  %v3537_v61 = vpack.c.bf16 %v712_v59, %v711_v58  ;;  %v724_v62 = vld [vmem:[%s3952_s29 + $0x168] sm:$0xff]  ;;  %v713_v0 = vld [vmem:[%s3952_s29 + $0x110] sm:$0xff] }
  0x53   : > { %3313 = vmatprep.mubr.msk.f32.mxu1 %vm3785_vm0, %v3786_v12  ;;  %v3555_v63 = vpack.c.bf16 %v724_v62, %v723_v60  ;;  %v714_v1 = vld [vmem:[%s3952_s29 + $0x118] sm:$0xff]  ;;  %v725_v3 = vld [vmem:[%s3952_s29 + $0x170] sm:$0xff]  ;;  %v719_v7 = vld [vmem:[%s3952_s29 + $0x140] sm:$0xff] }
  0x54   : > { %3499 = vmatpush3.bf16.msra.mxu0 %v3498_v26  ;;  %v3540_v2 = vpack.c.bf16 %v714_v1, %v713_v0  ;;  %v726_v5 = vld [vmem:[%s3952_s29 + $0x178] sm:$0xff]  ;;  %v720_v8 = vld [vmem:[%s3952_s29 + $0x148] sm:$0xff]  ;;  %v721_v10 = vld [vmem:[%s3952_s29 + $0x150] sm:$0xff] }
  0x55   : > { %3523 = vmatpush3.bf16.msra.mxu1 %v3522_v27  ;;  %3500 = vmatprep.subr.bf16.mxu0 %v3784_v4  ;;  %v3558_v6 = vpack.c.bf16 %v726_v5, %v725_v3  ;;  %v3549_v9 = vpack.c.bf16 %v720_v8, %v719_v7  ;;  %v722_v11 = vld [vmem:[%s3952_s29 + $0x158] sm:$0xff]  ;;  %v3094_v23 = vld [vmem:[%s3961_s0 + $0x7] ss:$0 sm:$0xff]  ;;  %v3090_v24 = vld [vmem:[%s3961_s0 + $0x3] ss:$0 sm:$0xff]  ;;  %s4410_s29 = sld [smem:[#allocation24_spill]] }
  0x56   : > { %3530 = vmatprep.subr.bf16.mxu1 %v3784_v4  ;;  %v3552_v13 = vpack.c.bf16 %v722_v11, %v721_v10  ;;  %v3091_v31 = vld [vmem:[%s3961_s0 + $0x4] ss:$0 sm:$0xff]  ;;  %v3087_v34 = vld [vmem:[%s3961_s0] ss:$0 sm:$0xff]  ;;  %v3093_v40 = vld [vmem:[%s3961_s0 + $0x6] ss:$0 sm:$0xff] }
  0x57   : > { %3270 = vmatmul.mubr.msk.f32.vlgmr.msra.gmra.mrb[2].mxu0 %vm811_vm1, %v4024_v19  ;;  %v3089_v43 = vld [vmem:[%s3961_s0 + $0x2] ss:$0 sm:$0xff] }
  0x58   : > { %3502 = vmatpush3.bf16.msra.mxu0 %v3501_v32  ;;  %3314 = vmatmul.mubr.msk.f32.vlgmr.msra.gmra.mrb[2].mxu1 %vm811_vm1, %v4024_v19  ;;  %v3092_v32 = vld [vmem:[%s3961_s0 + $0x5] ss:$0 sm:$0xff] }
  0x59   : > { %3532 = vmatpush3.bf16.msra.mxu1 %v3531_v33  ;;  %3503 = vmatprep.subr.bf16.mxu0 %v3784_v4 }
  0x5a   : > { %3533 = vmatprep.subr.bf16.mxu1 %v3784_v4  ;;  %3280 = vmatprep.mubr.msk.f32.mxu0 %vm3785_vm0, %v3786_v12 }
  0x5b   : > { %3335 = vmatprep.mubr.msk.f32.mxu1 %vm3785_vm0, %v3786_v12  ;;  %v1964_v0 = vld [vmem:[%s4410_s29] sm:$0xff] }
  0x5c   : > { %3505 = vmatpush3.bf16.msra.mxu0 %v3504_v38 }
  0x5d   : > { %3535 = vmatpush3.bf16.msra.mxu1 %v3534_v39  ;;  %3512 = vmatprep.subr.bf16.mxu0 %v3784_v4  ;;  %v3088_v39 = vld [vmem:[%s3961_s0 + $0x1] ss:$0 sm:$0xff] }
  0x5e   : > { %3542 = vmatprep.subr.bf16.mxu1 %v3784_v4 }
  0x5f   : > { %3281 = vmatmul.mubr.msk.f32.vlgmr.msra.gmra.mrb[4].mxu0 %vm811_vm1, %v4024_v19 }
  0x60   : > { %3514 = vmatpush3.bf16.msra.mxu0 %v3513_v44  ;;  %3336 = vmatmul.mubr.msk.f32.vlgmr.msra.gmra.mrb[4].mxu1 %vm811_vm1, %v4024_v19 }
  0x61   : > { %3515 = vmatprep.subr.bf16.mxu0 %v3784_v4  ;;  %3302 = vmatprep.mubr.msk.f32.mxu0 %vm3785_vm0, %v3786_v12 }
  0x62   : > { %3544 = vmatpush3.bf16.msra.mxu1 %v3543_v47  ;;  %3357 = vmatprep.mubr.msk.f32.mxu1 %vm3785_vm0, %v3786_v12  ;;  %v3096_v47 = vld [vmem:[%s3961_s0 + $0x9] ss:$0 sm:$0xff] }
  0x63   : > { %3545 = vmatprep.subr.bf16.mxu1 %v3784_v4 }
  0x64   : > { %3517 = vmatpush3.bf16.msra.mxu0 %v3516_v48 }
  0x65   : > { %3524 = vmatprep.subr.bf16.mxu0 %v3784_v4 }
  0x66   : > { %3547 = vmatpush3.bf16.msra.mxu1 %v3546_v57 }
  0x67   : > { %3303 = vmatmul.mubr.msk.f32.vlgmr.msra.gmra.mrb[6].mxu0 %vm811_vm1, %v4024_v19  ;;  %3554 = vmatprep.subr.bf16.mxu1 %v3784_v4 }
  0x68   : > { %3526 = vmatpush3.bf16.msra.mxu0 %v3525_v51  ;;  %3324 = vmatprep.mubr.msk.f32.mxu0 %vm3785_vm0, %v3786_v12  ;;  %v3095_v51 = vld [vmem:[%s3961_s0 + $0x8] ss:$0 sm:$0xff] }
  0x69   : > { %3527 = vmatprep.subr.bf16.mxu0 %v3784_v4  ;;  %3358 = vmatmul.mubr.msk.f32.vlgmr.msra.gmra.mrb[6].mxu1 %vm811_vm1, %v4024_v19 }
  0x6a   : > { %3556 = vmatpush3.bf16.msra.mxu1 %v3555_v63  ;;  %3379 = vmatprep.mubr.msk.f32.mxu1 %vm3785_vm0, %v3786_v12 }
  0x6b   : > { %3557 = vmatprep.subr.bf16.mxu1 %v3784_v4 }
  0x6c   : > { %3529 = vmatpush3.bf16.msra.mxu0 %v3528_v54 }
  0x6d   : > { %3536 = vmatprep.subr.bf16.mxu0 %v3784_v4 }
  0x6e   : > { %3559 = vmatpush3.bf16.msra.mxu1 %v3558_v6 }
  0x6f   : > { %3325 = vmatmul.mubr.msk.f32.vlgmr.msra.gmra.mrb[8].mxu0 %vm811_vm1, %v4024_v19  ;;  %3397 = vmatprep.subr.mxu1 %v3786_v12 }
  0x70   : > { %3346 = vmatprep.mubr.msk.f32.mxu0 %vm3785_vm0, %v3786_v12  ;;  %3538 = vmatpush3.bf16.msra.mxu0 %v3537_v61 }
  0x71   : > { %3539 = vmatprep.subr.bf16.mxu0 %v3784_v4  ;;  %3380 = vmatmul.mubr.msk.f32.vlgmr.msra.gmra.mrb[8].mxu1 %vm811_vm1, %v4024_v19 }
  0x72   : > { %3399 = vmatprep.mubr.msk.f32.mxu1 %vm3785_vm0, %v3786_v12 }
  0x74   : > { %3541 = vmatpush3.bf16.msra.mxu0 %v3540_v2 }
  0x75   : > { %3548 = vmatprep.subr.bf16.mxu0 %v3784_v4 }
  0x77   : > { %3347 = vmatmul.mubr.msk.f32.vlgmr.msra.gmra.mrb[10].mxu0 %vm811_vm1, %v4024_v19 }
  0x78   : > { %3550 = vmatpush3.bf16.msra.mxu0 %v3549_v9  ;;  %3368 = vmatprep.mubr.msk.f32.mxu0 %vm3785_vm0, %v3786_v12 }
  0x79   : > { %3551 = vmatprep.subr.bf16.mxu0 %v3784_v4 }
  0x7c   : > { %3553 = vmatpush3.bf16.msra.mxu0 %v3552_v13 }
  0x7d   : > { %3382 = vmatprep.subr.mxu0 %v3786_v12 }
  0x7f   : > { %3369 = vmatmul.mubr.msk.f32.vlgmr.msra.gmra.mrb[12].mxu0 %vm811_vm1, %v4024_v19 }
  0x80   : > { %3384 = vmatprep.mubr.msk.f32.mxu0 %vm3785_vm0, %v3786_v12 }
 0x122   : > { %v881_v14 = vpop.f32.mrb[0].mxu0 }
 0x123   : > { %v3260_v15 = vpop.f32.mrb[1].mxu0  ;;  %v1091_v16 = vpop.f32.mrb[0].mxu1  ;;  %v882_v38 = vadd.f32 %v3087_v34, %v881_v14 }
 0x124   : > { %v3293_v17 = vpop.f32.mrb[1].mxu1  ;;  %v1092_v30 = vadd.f32 %v3090_v24, %v1091_v16 }
 0x12a   : > { %v951_v18 = vpop.f32.mrb[2].mxu0 }
 0x12b   : > { %v3271_v20 = vpop.f32.mrb[3].mxu0  ;;  %v1231_v21 = vpop.f32.mrb[2].mxu1  ;;  %v952_v41 = vadd.f32 %v3088_v39, %v951_v18 }
 0x12c   : > { %v3315_v22 = vpop.f32.mrb[3].mxu1  ;;  %v1232_v37 = vadd.f32 %v3092_v32, %v1231_v21 }
 0x132   : > { %v1021_v25 = vpop.f32.mrb[4].mxu0 }
 0x133   : > { %v3282_v26 = vpop.f32.mrb[5].mxu0  ;;  %v1371_v27 = vpop.f32.mrb[4].mxu1  ;;  %v1022_v46 = vadd.f32 %v3089_v43, %v1021_v25 }
 0x134   : > { %v1372_v28 = vadd.f32 %v3094_v23, %v1371_v27  ;;  %v3337_v29 = vpop.f32.mrb[5].mxu1 }
 0x136   : > { %3398 = vmatpush3.xpose.msk.msra.mxu1 %vm1655_vm2, %v1372_v28 }
 0x137   : > { %3407 = vmatprep.subr.mxu1 %v3786_v12 }
 0x139   : > { %3400 = vmatmul.mubr.msk.f32.vlgmr.msra.gmra.mrb[10].mxu1 %vm1655_vm2, %v1092_v30 }
 0x13a   : > { %v1161_v33 = vpop.f32.mrb[6].mxu0  ;;  %3409 = vmatprep.mubr.msk.f32.mxu1 %vm3785_vm0, %v3786_v12 }
 0x13b   : > { %v1162_v35 = vadd.f32 %v3091_v31, %v1161_v33  ;;  %v3304_v36 = vpop.f32.mrb[7].mxu0 }
 0x13c   : > { %v1511_v48 = vpop.f32.mrb[6].mxu1 }
 0x13d   : > { %3383 = vmatpush3.xpose.msk.msra.mxu0 %vm1655_vm2, %v1162_v35  ;;  %v1512_v49 = vadd.f32 %v3096_v47, %v1511_v48  ;;  %v3359_v50 = vpop.f32.mrb[7].mxu1  ;;  %v3098_v47 = vld [vmem:[%s3961_s0 + $0xb] ss:$0 sm:$0xff] }
 0x13e   : > { %3387 = vmatprep.subr.mxu0 %v3786_v12 }
 0x13f   : > { %3408 = vmatpush3.msra.mxu1 %v1512_v49 }
 0x140   : > { %3385 = vmatmul.mubr.msk.f32.vlgmr.msra.gmra.mrb[14].mxu0 %vm1655_vm2, %v882_v38  ;;  %3417 = vmatprep.subr.mxu1 %v3786_v12 }
 0x141   : > { %3388 = vmatpush3.xpose.msk.msra.mxu0 %vm1655_vm2, %v1232_v37  ;;  %3389 = vmatprep.mubr.msk.f32.mxu0 %vm3785_vm0, %v3786_v12 }
 0x142   : > { %v1301_v42 = vpop.f32.mrb[8].mxu0  ;;  %3392 = vmatprep.subr.mxu0 %v3786_v12 }
 0x143   : > { %v1302_v44 = vadd.f32 %v3093_v40, %v1301_v42  ;;  %v3326_v45 = vpop.f32.mrb[9].mxu0  ;;  %v3097_v42 = vld [vmem:[%s3961_s0 + $0xa] ss:$0 sm:$0xff]  ;;  %s4416_s0 = sld [smem:[#allocation12_spill]] }
 0x144   : > { %3390 = vmatmul.mubr.msk.f32.vlgmr.msra.gmra.mrb[16].mxu0 %vm1655_vm2, %v952_v41  ;;  %v4163_v55 = vpop.f32.mrb[8].mxu1 }
 0x145   : > { %3393 = vmatpush3.xpose.msk.msra.mxu0 %vm1655_vm2, %v1302_v44  ;;  %3394 = vmatprep.mubr.msk.f32.mxu0 %vm3785_vm0, %v3786_v12  ;;  %v3381_v56 = vpop.f32.mrb[9].mxu1  ;;  %v1652_v50 = vadd.f32 %v3098_v47, %v4163_v55  ;;  %v2305_v55 = vld [vmem:[%s4411_s25] sm:$0xff]  ;;  %v2741_v47 = vld [vmem:[%s3984_s2 + $0x48] sm:$0xff] }
 0x146   : > { %3402 = vmatprep.subr.mxu0 %v3786_v12  ;;  %v2306_v56 = vld [vmem:[%s4411_s25 + $0x8] sm:$0xff] }
 0x148   : > { %3395 = vmatmul.mubr.msk.f32.vlgmr.msra.gmra.mrb[18].mxu0 %vm1655_vm2, %v1022_v46 }
 0x149   : > { %3404 = vmatprep.mubr.msk.f32.mxu0 %vm3785_vm0, %v3786_v12  ;;  %p3135_p0 = scmp.ne.s32.totalorder %s4416_s0, 1 }
 0x14a   : > { %v1441_v52 = vpop.f32.mrb[10].mxu0 }
 0x14b   : > { %v1442_v53 = vadd.f32 %v3095_v51, %v1441_v52  ;;  %v3348_v54 = vpop.f32.mrb[11].mxu0 }
 0x14d   : > { %3403 = vmatpush3.msra.mxu0 %v1442_v53 }
 0x14e   : > { %3412 = vmatprep.subr.mxu0 %v3786_v12 }
 0x152   : > { %v4166_v57 = vpop.f32.mrb[12].mxu0 }
 0x153   : > { %v3370_v58 = vpop.f32.mrb[13].mxu0  ;;  %v1582_v46 = vadd.f32 %v3097_v42, %v4166_v57  ;;  %v2307_v57 = vld [vmem:[%s4411_s25 + $0x10] sm:$0xff] }
 0x20c   : > { %v1956_v59 = vpop.f32.mrb[10].mxu1 }
 0x20d   : > { %v3401_v60 = vpop.f32.mrb[11].mxu1  ;;  %v1963_v9 = vmul.f32 0.35355338, %v1956_v59 }
 0x20e   : > { %v2308_v60 = vld [vmem:[%s4411_s25 + $0x18] sm:$0xff] }
 0x20f   : > { %v1968_v16 = vadd.f32 %v1964_v0, %v1963_v9 }
 0x211   : > { %v1978_v17 = vsel %vm1655_vm2, %v1968_v16, -inf }
 0x213   : > { %v1728_v61 = vpop.f32.mrb[14].mxu0 }
 0x214   : > { %v1960_v62 = vmul.f32 0.35355338, %v1728_v61  ;;  %v3386_v63 = vpop.f32.mrb[15].mxu0 }
 0x216   : > { %v1965_v1 = vadd.f32 %v1964_v0, %v1960_v62 }
 0x217   : > { %v1804_v2 = vpop.f32.mrb[16].mxu0 }
 0x218   : > { %v1961_v3 = vmul.f32 0.35355338, %v1804_v2  ;;  %v3391_v5 = vpop.f32.mrb[17].mxu0  ;;  %v1969_v6 = vsel %vm1655_vm2, %v1965_v1, -inf }
 0x219   : > { %1970 = vmax.xlane.f32.xlu0 %v1969_v6 }
 0x21a   : > { %v1966_v7 = vadd.f32 %v1964_v0, %v1961_v3 }
 0x21b   : > { %v1880_v8 = vpop.f32.mrb[18].mxu0 }
 0x21c   : > { %v1962_v10 = vmul.f32 0.35355338, %v1880_v8  ;;  %v3396_v11 = vpop.f32.mrb[19].mxu0  ;;  %v1972_v13 = vsel %vm1655_vm2, %v1966_v7, -inf }
 0x21d   : > { %1973 = vmax.xlane.f32.xlu0 %v1972_v13 }
 0x21e   : > { %v1967_v14 = vadd.f32 %v1964_v0, %v1962_v10 }
 0x220   : > { %v1975_v15 = vsel %vm1655_vm2, %v1967_v14, -inf }
 0x221   : > { %1976 = vmax.xlane.f32.xlu1 %v1975_v15 }
 0x225   : > { %1979 = vmax.xlane.f32.xlu1 %v1978_v17 }
 0x2a6   : > { %v1971_v18 = vpop.xlane.xlu0 %1970 }
 0x2a7   : > { %v1981_v20 = vsub.f32 %v1965_v1, %v1971_v18 }
 0x2a9   : > { %v1985_v21 = vmul.f32 1.442695, %v1981_v20 }
 0x2aa   : > { %v1974_v22 = vpop.xlane.xlu0 %1973 }
 0x2ab   : > { %3666 = vpow2.f32 %v1985_v21  ;;  %v1982_v23 = vsub.f32 %v1966_v7, %v1974_v22 }
 0x2ad   : > { %v1987_v24 = vmul.f32 1.442695, %v1982_v23 }
 0x2ae   : > { %v1977_v25 = vpop.xlane.xlu1 %1976 }
 0x2af   : > { %3668 = vpow2.f32 %v1987_v24  ;;  %v1983_v26 = vsub.f32 %v1967_v14, %v1977_v25 }
 0x2b1   : > { %v1989_v27 = vmul.f32 1.442695, %v1983_v26 }
 0x2b2   : > { %v1980_v28 = vpop.xlane.xlu1 %1979 }
 0x2b3   : > { %3670 = vpow2.f32 %v1989_v27  ;;  %v1984_v29 = vsub.f32 %v1968_v16, %v1980_v28 }
 0x2b5   : > { %v3667_v30 = vpop.eup %3666  ;;  %v1991_v31 = vmul.f32 1.442695, %v1984_v29  ;;  %v2647_v29 = vld [vmem:[%s3974_s27] sm:$0xff] }
 0x2b6   : > { %v1993_v32 = vsel %vm1655_vm2, %v3667_v30, 0.0 }
 0x2b7   : > { %3672 = vpow2.f32 %v1991_v31  ;;  %1994 = vadd.xlane.f32.xlu0 %v1993_v32  ;;  %v2650_v32 = vld [vmem:[%s3974_s27 + $0x18] sm:$0xff] }
 0x2b9   : > { %v3669_v33 = vpop.eup %3668 }
 0x2ba   : > { %v1996_v34 = vsel %vm1655_vm2, %v3669_v33, 0.0 }
 0x2bb   : > { %1997 = vadd.xlane.f32.xlu1 %v1996_v34  ;;  %v2732_v34 = vld [vmem:[%s3984_s2] sm:$0xff] }
 0x2bd   : > { %v3671_v35 = vpop.eup %3670 }
 0x2be   : > { %v1999_v36 = vsel %vm1655_vm2, %v3671_v35, 0.0 }
 0x2bf   : > { %2000 = vadd.xlane.f32.xlu0 %v1999_v36  ;;  %v2734_v36 = vld [vmem:[%s3984_s2 + $0x10] sm:$0xff] }
 0x2c1   : > { %v3673_v37 = vpop.eup %3672 }
 0x2c2   : > { %v2002_v38 = vsel %vm1655_vm2, %v3673_v37, 0.0 }
 0x2c3   : > { %2003 = vadd.xlane.f32.xlu1 %v2002_v38  ;;  %v2735_v38 = vld [vmem:[%s3984_s2 + $0x18] sm:$0xff] }
 0x344   : > { %v1995_v39 = vpop.xlane.xlu0 %1994 }
 0x345   : > { %3674 = vrcp.f32 %v1995_v39  ;;  %v3570_v39 = vpack.c.bf16 %v2735_v38, %v2734_v36 }
 0x348   : > { %v1998_v40 = vpop.xlane.xlu1 %1997 }
 0x349   : > { %3676 = vrcp.f32 %v1998_v40  ;;  %v2736_v40 = vld [vmem:[%s3984_s2 + $0x20] sm:$0xff] }
 0x34c   : > { %v2001_v41 = vpop.xlane.xlu0 %2000 }
 0x34d   : > { %3678 = vrcp.f32 %v2001_v41  ;;  %v2737_v41 = vld [vmem:[%s3984_s2 + $0x28] sm:$0xff] }
 0x34e   : > { %v3573_v42 = vpack.c.bf16 %v2737_v41, %v2736_v40 }
 0x34f   : > { %v3675_v43 = vpop.eup %3674 }
 0x350   : > { %v2006_v44 = vmul.f32 %v3675_v43, %v3667_v30  ;;  %v2004_v45 = vpop.xlane.xlu1 %2003  ;;  %v2648_v30 = vld [vmem:[%s3974_s27 + $0x8] sm:$0xff]  ;;  %v2738_v43 = vld [vmem:[%s3984_s2 + $0x30] sm:$0xff] }
 0x351   : > { %3680 = vrcp.f32 %v2004_v45  ;;  %v3561_v31 = vpack.c.bf16 %v2648_v30, %v2647_v29 }
 0x352   : > { %3405 = vmatmul.mubr.msk.f32.vlgmr.msra.gmra.mrb[20].mxu0 %vm1655_vm2, %v2006_v44  ;;  %v2739_v44 = vld [vmem:[%s3984_s2 + $0x38] sm:$0xff] }
 0x353   : > { %v3677_v48 = vpop.eup %3676  ;;  %3413 = vmatpush3.msra.mxu0 %v1582_v46  ;;  %3414 = vmatprep.mubr.msk.f32.mxu0 %vm3785_vm0, %v3786_v12  ;;  %v3576_v45 = vpack.c.bf16 %v2739_v44, %v2738_v43  ;;  %v2740_v46 = vld [vmem:[%s3984_s2 + $0x40] sm:$0xff] }
 0x354   : > { %v2008_v49 = vmul.f32 %v3677_v48, %v3669_v33  ;;  %3422 = vmatprep.subr.mxu0 %v3786_v12  ;;  %v3579_v48 = vpack.c.bf16 %v2741_v47, %v2740_v46 }
 0x356   : > { %3410 = vmatmul.mubr.msk.f32.vlgmr.msra.gmra.mrb[12].mxu1 %vm1655_vm2, %v2008_v49  ;;  %v2742_v49 = vld [vmem:[%s3984_s2 + $0x50] sm:$0xff] }
 0x357   : > { %v3679_v51 = vpop.eup %3678  ;;  %3418 = vmatpush3.msra.mxu1 %v1652_v50  ;;  %3419 = vmatprep.mubr.msk.f32.mxu1 %vm3785_vm0, %v3786_v12  ;;  %v2743_v50 = vld [vmem:[%s3984_s2 + $0x58] sm:$0xff] }
 0x358   : > { %v2010_v52 = vmul.f32 %v3679_v51, %v3671_v35  ;;  %3427 = vmatprep.subr.mxu1 %v3786_v12  ;;  %v2733_v35 = vld [vmem:[%s3984_s2 + $0x8] sm:$0xff]  ;;  %v3582_v51 = vpack.c.bf16 %v2743_v50, %v2742_v49 }
 0x35a   : > { %3415 = vmatmul.mubr.msk.f32.vlgmr.msra.gmra.mrb[22].mxu0 %vm1655_vm2, %v2010_v52  ;;  %v2744_v52 = vld [vmem:[%s3984_s2 + $0x60] sm:$0xff] }
 0x35b   : > { %v3681_v53 = vpop.eup %3680  ;;  %3424 = vmatprep.mubr.msk.f32.mxu0 %vm3785_vm0, %v3786_v12  ;;  %3423 = vmatpush3.msra.mxu0 %v2305_v55 }
 0x35c   : > { %v2012_v54 = vmul.f32 %v3681_v53, %v3673_v37  ;;  %3432 = vmatprep.subr.mxu0 %v3786_v12  ;;  %v3567_v37 = vpack.c.bf16 %v2733_v35, %v2732_v34  ;;  %v2745_v53 = vld [vmem:[%s3984_s2 + $0x68] sm:$0xff] }
 0x35e   : > { %3420 = vmatmul.mubr.msk.f32.vlgmr.msra.gmra.mrb[14].mxu1 %vm1655_vm2, %v2012_v54  ;;  %v3585_v54 = vpack.c.bf16 %v2745_v53, %v2744_v52 }
 0x35f   : > { %3429 = vmatprep.mubr.msk.f32.mxu1 %vm3785_vm0, %v3786_v12  ;;  %3428 = vmatpush3.msra.mxu1 %v2306_v56 }
 0x360   : > { %3437 = vmatprep.subr.mxu1 %v3786_v12 }
 0x425   : > { %v2082_v58 = vpop.f32.mrb[20].mxu0 }
 0x426   : > { %v3406_v59 = vpop.f32.mrb[21].mxu0  ;;  %3425 = vmatmul.mubr.msk.f32.vlgmr.msra.gmra.mrb[24].mxu0 %vm1655_vm2, %v2082_v58 }
 0x427   : > { %3433 = vmatpush3.msra.mxu0 %v2307_v57  ;;  %3434 = vmatprep.mubr.msk.f32.mxu0 %vm3785_vm0, %v3786_v12  ;;  %v3128_v59 = vld [vmem:[%s4413_s22] ss:$0 sm:$0xff] }
 0x428   : > { %3560 = vmatprep.subr.bf16.mxu0 %v3784_v4 }
 0x429   : > { %v2155_v61 = vpop.f32.mrb[12].mxu1 }
 0x42a   : > { %v3411_v62 = vpop.f32.mrb[13].mxu1  ;;  %3430 = vmatmul.mubr.msk.f32.vlgmr.msra.gmra.mrb[16].mxu1 %vm1655_vm2, %v2155_v61  ;;  %v3129_v61 = vld [vmem:[%s4414_s20] ss:$0 sm:$0xff] }
 0x42b   : > { %3438 = vmatpush3.msra.mxu1 %v2308_v60  ;;  %3439 = vmatprep.mubr.msk.f32.mxu1 %vm3785_vm0, %v3786_v12 }
 0x42c   : > { %3566 = vmatprep.subr.bf16.mxu1 %v3784_v4 }
 0x42d   : > { %v2228_v63 = vpop.f32.mrb[22].mxu0 }
 0x42e   : > { %v3416_v0 = vpop.f32.mrb[23].mxu0  ;;  %3435 = vmatmul.mubr.msk.f32.vlgmr.msra.gmra.mrb[26].mxu0 %vm1655_vm2, %v2228_v63  ;;  %v2746_v63 = vld [vmem:[%s3984_s2 + $0x70] sm:$0xff] }
 0x42f   : > { %3450 = vmatprep.mubr.msk.f32.mxu0 %vm3785_vm0, %v3786_v12  ;;  %3562 = vmatpush3.bf16.msra.mxu0 %v3561_v31  ;;  %v2747_v0 = vld [vmem:[%s3984_s2 + $0x78] sm:$0xff] }
 0x430   : > { %3563 = vmatprep.subr.bf16.mxu0 %v3784_v4 }
 0x431   : > { %v2301_v1 = vpop.f32.mrb[14].mxu1 }
 0x432   : > { %v3421_v2 = vpop.f32.mrb[15].mxu1  ;;  %3440 = vmatmul.mubr.msk.f32.vlgmr.msra.gmra.mrb[18].mxu1 %vm1655_vm2, %v2301_v1  ;;  %v3588_v1 = vpack.c.bf16 %v2747_v0, %v2746_v63 }
 0x433   : > { %3485 = vmatprep.mubr.msk.f32.mxu1 %vm3785_vm0, %v3786_v12  ;;  %v3127_v12 = vld [vmem:[%s4412_s16] ss:$0 sm:$0xff]  ;;  %3568 = vmatpush3.bf16.msra.mxu1 %v3567_v37 }
 0x434   : > { %3569 = vmatprep.subr.bf16.mxu1 %v3784_v4  ;;  %v3130_v2 = vld [vmem:[%s4415_s24] ss:$0 sm:$0xff] }
 0x437   : > { %3571 = vmatpush3.bf16.msra.mxu1 %v3570_v39 }
 0x438   : > { %3572 = vmatprep.subr.bf16.mxu1 %v3784_v4 }
 0x43b   : > { %3574 = vmatpush3.bf16.msra.mxu1 %v3573_v42 }
 0x43c   : > { %3575 = vmatprep.subr.bf16.mxu1 %v3784_v4 }
 0x43f   : > { %3577 = vmatpush3.bf16.msra.mxu1 %v3576_v45 }
 0x440   : > { %3578 = vmatprep.subr.bf16.mxu1 %v3784_v4 }
 0x443   : > { %3580 = vmatpush3.bf16.msra.mxu1 %v3579_v48 }
 0x444   : > { %3581 = vmatprep.subr.bf16.mxu1 %v3784_v4 }
 0x447   : > { %3583 = vmatpush3.bf16.msra.mxu1 %v3582_v51 }
 0x448   : > { %3584 = vmatprep.subr.bf16.mxu1 %v3784_v4 }
 0x44b   : > { %3586 = vmatpush3.bf16.msra.mxu1 %v3585_v54 }
 0x44c   : > { %3587 = vmatprep.subr.bf16.mxu1 %v3784_v4 }
 0x44f   : > { %3589 = vmatpush3.bf16.msra.mxu1 %v3588_v1 }
 0x4f9   : > { %v2378_v3 = vpop.f32.mrb[24].mxu0 }
 0x4fa   : > { %v3426_v5 = vpop.f32.mrb[25].mxu0  ;;  %v2601_v7 = vsel %vm811_vm1, %v2378_v3, 0.0 }
 0x4fd   : > { %v2451_v6 = vpop.f32.mrb[16].mxu1 }
 0x4fe   : > { %v2602_v8 = vsel %vm811_vm1, %v2451_v6, 0.0  ;;  %v3431_v9 = vpop.f32.mrb[17].mxu1 }
 0x4ff   : > { %v2603_v10 = vadd.f32 %v2602_v8, %v2601_v7  ;;  %v3132_v8 = vld [vmem:[%s620_s4] ss:$0 sm:$0xff] }
 0x501   : > { %v2524_v11 = vpop.f32.mrb[26].mxu0 }
 0x502   : > { %v2604_v13 = vsel %vm811_vm1, %v2524_v11, 0.0  ;;  %v3436_v14 = vpop.f32.mrb[27].mxu0 }
 0x503   : > { %v2605_v15 = vadd.f32 %v2604_v13, %v2603_v10 }
 0x505   : > { %v2597_v16 = vpop.f32.mrb[18].mxu1 }
 0x506   : > { %v2606_v17 = vsel %vm811_vm1, %v2597_v16, 0.0  ;;  %v3441_v18 = vpop.f32.mrb[19].mxu1 }
 0x507   : > { %v2607_v20 = vadd.f32 %v2606_v17, %v2605_v15 }
 0x509   : > { %v2615_v21 = vadd.f32 %v3127_v12, %v2607_v20 }
 0x50b   : > { %v2616_v22 = vadd.f32 %v2615_v21, %v4024_v19  ;;  %v2649_v19 = vld [vmem:[%s3974_s27 + $0x10] sm:$0xff] }
 0x50c   : > { %v3564_v33 = vpack.c.bf16 %v2650_v32, %v2649_v19 }
 0x50d   : > { %v2619_v23 = vsel %vm811_vm1, %v2616_v22, 0.0 }
 0x50e   : > { %2620 = vadd.xlane.f32.xlu0 %v2619_v23  ;;  %3565 = vmatpush3.bf16.msra.mxu0 %v3564_v33 }
 0x59b   : > { %v2621_v24 = vpop.xlane.xlu0 %2620 }
 0x59c   : > { %v2623_v25 = vmul.f32 0.03125, %v2621_v24  ;;  %v3133_v24 = vld [vmem:[%s623_s15] ss:$0 sm:$0xff] }
 0x59e   : > { %v2624_v26 = vsub.f32 %v2616_v22, %v2623_v25 }
 0x5a0   : > { %v2625_v27 = vmul.f32 %v2624_v26, %v2624_v26 }
 0x5a2   : > { %v2626_v28 = vsel %vm811_vm1, %v2625_v27, 0.0 }
 0x5a3   : > { %2627 = vadd.xlane.f32.xlu1 %v2626_v28 }
 0x630   : > { %v2628_v55 = vpop.xlane.xlu1 %2627 }
 0x631   : > { %v2629_v56 = vmul.f32 0.03125, %v2628_v55 }
 0x633   : > { %v2630_v57 = vadd.f32 1e-05, %v2629_v56 }
 0x635   : > { %3682 = vrsqrt.f32 %v2630_v57 }
 0x63f   : > { %v3683_v58 = vpop.eup %3682 }
 0x640   : > { %v2632_v60 = vmul.f32 %v3683_v58, %v2624_v26  ;;  %v3134_v26 = vld [vmem:[%s626_s19] ss:$0 sm:$0xff] }
 0x642   : > { %v2639_v62 = vmul.f32 %v3128_v59, %v2632_v60 }
 0x644   : > { %v2646_v4 = vadd.f32 %v3129_v61, %v2639_v62 }
 0x646   : > { %3451 = vmatmul.mubr.msk.f32.vlgmr.msra.gmra.mrb[28].mxu0 %vm811_vm1, %v2646_v4 }
 0x719   : > { %v2727_v3 = vpop.f32.mrb[28].mxu0 }
 0x71a   : > { %v2728_v5 = vadd.f32 %v3130_v2, %v2727_v3  ;;  %v3452_v6 = vpop.f32.mrb[29].mxu0 }
 0x71c   : > { %v2731_v7 = vmax.f32 %v2728_v5, 0.0 }
 0x71e   : > { %3486 = vmatmul.mubr.f32.vlgmr.msra.gmra.mrb[20].mxu1 %v2731_v7 }
 0x7f1   : > { %v2821_v9 = vpop.f32.mrb[20].mxu1 }
 0x7f2   : > { %v2822_v10 = vadd.f32 %v3132_v8, %v2821_v9  ;;  %v3487_v11 = vpop.f32.mrb[21].mxu1 }
 0x7f4   : > { %v2825_v13 = vadd.f32 %v2822_v10, %v2646_v4 }
 0x7f6   : > { %v2828_v14 = vsel %vm811_vm1, %v2825_v13, 0.0 }
 0x7f7   : > { %2829 = vadd.xlane.f32.xlu0 %v2828_v14 }
 0x884   : > { %v2830_v15 = vpop.xlane.xlu0 %2829 }
 0x885   : > { %v2831_v16 = vmul.f32 0.03125, %v2830_v15 }
 0x887   : > { %v2832_v17 = vsub.f32 %v2825_v13, %v2831_v16 }
 0x889   : > { %v2833_v12 = vmul.f32 %v2832_v17, %v2832_v17 }
 0x88b   : > { %v2834_v18 = vsel %vm811_vm1, %v2833_v12, 0.0 }
 0x88c   : > { %2835 = vadd.xlane.f32.xlu1 %v2834_v18 }
 0x919   : > { %v2836_v20 = vpop.xlane.xlu1 %2835 }
 0x91a   : > { %v2837_v21 = vmul.f32 0.03125, %v2836_v20 }
 0x91c   : > { %v2838_v22 = vadd.f32 1e-05, %v2837_v21 }
 0x91e   : > { %3684 = vrsqrt.f32 %v2838_v22 }
 0x928   : > { %v3685_v23 = vpop.eup %3684 }
 0x929   : > { %v2840_v25 = vmul.f32 %v3685_v23, %v2832_v17  ;;  %2859 = sbr.rel (%p3135_p0) target bundleno = 2352 (0x930), region = 114 }
 0x92b   : > { %v2847_v27 = vmul.f32 %v3133_v24, %v2840_v25 }
 0x92d   : > { %v2854_v28 = vadd.f32 %v3134_v26, %v2847_v27 }
 0x92f   : > { %2855 = vst.msk [vmem:[#allocation2] sm:$0xff] %vm811_vm1, %v2854_v28  ;;  %2860 = vst.msk [vmem:[%s581_s14] sm:$0xff] (!%p3135_p0), %vm811_vm1, %v2854_v28 }
 0x930 PF: > { %s4417_s21 = sld [smem:[#allocation13_spill]]  ;;  %s4418_s15 = sld [smem:[#allocation10_spill]] }
 0x931   : > { %s4420_s19 = sld [smem:[#allocation29_spill]]  ;;  %s2875_s26 = sshll.u32 %s581_s14, 4  ;;  %s2876_s26 = int_to_ptr.vmem [resolvable:$true] %s2875_s26 }
 0x932   : > { %s3686_s1 = scalar_lea.vmem %s2876_s26, 128  ;;  %s3787_s24 = smov [#allocation4]  }
 0x933   : > { %p3687_p1 = scmp.ne.s32.totalorder %s2876_s26, %s3686_s1  ;;  %s3690_s3 = sshll.u32 %s3787_s24, 4  ;;  %s3691_s3 = int_to_ptr.vmem [resolvable:$false] %s3690_s3 }
 0x934   : > { %s3692_s8 = scalar_lea.vmem %s3691_s3, 256  ;;  %p3693_p5 = scmp.lt.s32.totalorder %s2876_s26, %s3691_s3 }
 0x935   : > { %p3688_p2 = pnand %p3687_p1, %p3912_p3  ;;  %p3694_p6 = scmp.lt.s32.totalorder %s3692_s8, %s3686_s1 }
 0x936   : > { %s3137_s27 = sshll.u32 %s4417_s21, 7  ;;  %s4422_s20 = sand.u32 1, %s4418_s15  }
 0x937   : > { %s4421_s22 = smov %s4420_s19  ;;  %s4299_s28 = scalar_lea.hbm %s4420_s19, %s3137_s27 }
 0x938   : > { %s2862_s30 = scalar_lea.sflag [#allocation5], %s4422_s20  ;;  %p3689_p4 = pneg %p3688_p2 }
 0x939   : > { %p3695_p7 = por %p3694_p6, %p3693_p5 }
 0x93b   : > { %p3696_p8 = pnand %p3695_p7, %p3689_p4 }
 0x93d   : > { %3699 = shalt.err (!%p3696_p8)
}
 0x93e   : > { %s3700_s23 = scalar_lea.hbm %s4299_s28, 128  ;;  %s3704_s4 = scalar_lea.hbm %s4421_s22, 256 }
 0x93f   : > { %p3701_p10 = scmp.ne.s32.totalorder %s4299_s28, %s3700_s23  ;;  %p3705_p13 = scmp.lt.u32.totalorder %s4299_s28, %s4421_s22 }
 0x940   : > { %p3706_p0 = scmp.lt.u32.totalorder %s3704_s4, %s3700_s23  ;;  %p3708_p2 = scmp.lt.u32.totalorder %s3700_s23, %s4299_s28 }
 0x941   : > { %p3702_p11 = pnand %p3701_p10, %p3912_p3 }
 0x942   : > { %p3707_p1 = por %p3706_p0, %p3705_p13 }
 0x943   : > { %p3703_p12 = pneg %p3702_p11 }
 0x944   : > { %p3709_p4 = por %p3708_p2, %p3707_p1 }
 0x946   : > { %p3710_p5 = pnand %p3709_p4, %p3703_p12 }
 0x948   : > { %3713 = shalt.err (!%p3710_p5)
}
 0x949   : > { %3592 = dma.vmem_to_hbm [thread:$0]  (%p3912_p3), %s2876_s26, 128, %s4299_s28, %s2862_s30  }
 0x94a PF: > { %s4423_s0 = sld [smem:[#allocation16_spill]]  ;;  %s4424_s21 = sld [smem:[#allocation9_spill]] }
 0x950   : > { %p3598_p6 = scmp.ge.s32.totalorder %s4423_s0, 2  ;;  %s2887_s27 = sand.u32 1, %s4424_s21  }
 0x951   : > { %s2888_s17 = scalar_lea.sflag [#allocation5], %s2887_s27 }
 0x952   : > { %p3595_p7 = pnand %p3598_p6, %p3922_p9 }
 0x954   : > { %3749 = dma.done.wait (!%p3595_p7), %s2888_s17, 128  }
 0x955   : > { %3751 = vsyncadd (!%p3595_p7), %s2888_s17, 4294967168  ;;  %s27_s20 = sadd.s32 1, %s4423_s0   ;;  %s4426_s29 = sld [smem:[#allocation10_spill]] }
 0x956   : > { %p24_p8 = scmp.ge.s32.totalorder %s27_s20, 6   ;;  %s4427_s30 = sld [smem:[#allocation11_spill]] }
 0x957   : > { %s4428_s15 = sld [smem:[#allocation21_spill]]  ;;  %s4429_s16 = sld [smem:[#allocation14_spill]] }
 0x958   : > { %s4430_s17 = sld [smem:[#allocation15_spill]]  ;;  %s4431_s18 = sld [smem:[#allocation17_spill]] }
 0x959   : > { %s4432_s19 = sld [smem:[#allocation19_spill]]  ;;  %26 = sbr.rel (!%p24_p8) target bundleno = 13 (0xd), region = 191 }
 0x960   :  { %2893 = vsyncpa [#allocation5], 1 }
 0x961   :  { %2895 = vsyncpa [#allocation5 + $0x1], 1 }
 0x962   :  { %2896 = vsyncmov [#allocation3] }
 0x965   :  { %s2897_s28 = vpop.sfrf %2896 }
 0x966   :  { %p3140_p3 = scmp.ne.s32.totalorder %s2897_s28, 0 }
 0x968   :  { %2901 = shalt.err (%p3140_p3)  }

</bundles_post_ra>
